<compile_context>
chip_gen: v6e
topology: v6e:2x2x1
jax: 0.10.0
libtpu: 0.0.40
codegen_flags: <defaults>
</compile_context>

<pallas_src>
import functools
import math

import numpy as np
import jax
import jax.numpy as jnp
from jax.experimental import pallas as pl
from jax.experimental.pallas import tpu as pltpu

EPS = 1e-5  # BatchNorm1d default eps


# ---------------------------------------------------------------------------
# In-kernel helpers
# ---------------------------------------------------------------------------
def _moments(x):
    """Mean / biased variance over all elements, kept as (1, 1) tiles.

    sum(x) and sum(x*x) are independent reductions (overlap on the XLU).
    Variance is clamped >= 0: the fused-moment form E[x^2] - mean^2 can go
    slightly negative from fp32 cancellation.
    """
    inv_n = 1.0 / x.size  # static python float
    mean = jnp.sum(x, keepdims=True) * inv_n
    ex2 = jnp.sum(x * x, keepdims=True) * inv_n
    var = jnp.maximum(ex2 - mean * mean, 0.0)
    return mean, var


def _bn_relu(x, gamma, beta):
    """BatchNorm1d(1, track_running_stats=False) over all (N, L) elems + ReLU."""
    mean, var = _moments(x)
    scale = gamma * jax.lax.rsqrt(var + EPS)      # EUP
    bias = beta - mean * scale
    return jnp.maximum(x * scale + bias, 0.0)     # single fused mul+add pass


def _conv1x1_bn(x, w, gamma, beta, relu=True):
    """1x1 conv (scalar w, bias b) folded into the following BatchNorm.

    bn(w*x + b) = w*(x - mean(x)) * rsqrt(w^2*var(x) + eps) * gamma + beta
    (the conv bias cancels exactly against the batch mean; eps is added AFTER
    scaling the variance, matching the reference bit-for-bit in structure).
    """
    mean, var = _moments(x)
    scale = (gamma * w) * jax.lax.rsqrt((w * w) * var + EPS)
    bias = beta - mean * scale
    y = x * scale + bias
    return jnp.maximum(y, 0.0) if relu else y


def _conv_transpose(x, w_ref):
    """ConvTranspose1d (stride 1, no padding) as K shifted accumulates.

    x: (N, L_in) VMEM value, w_ref: (K,) SMEM ref.  Output (N, L_in + K - 1).
    Each term is a static lane-offset slice of a zero-padded tile times an
    SMEM scalar -> VPU fma + XLU lane shift; no MXU, no band matrix.
    """
    n, l_in = x.shape
    k = w_ref.shape[0]
    if k == 1:
        return x * w_ref[0]
    l_out = l_in + k - 1
    z = jnp.zeros((n, k - 1), dtype=x.dtype)
    xpp = jnp.concatenate([z, x, z], axis=1)          # (n, l_out + k - 1)
    acc = xpp[:, k - 1:k - 1 + l_out] * w_ref[0]
    for j in range(1, k):                              # static unroll, K <= ~33
        acc = acc + xpp[:, k - 1 - j:k - 1 - j + l_out] * w_ref[j]
    return acc


# ---------------------------------------------------------------------------
# Pallas kernel (one grid step == one independent forward pass)
# ---------------------------------------------------------------------------
def cnn_time_kernel(scal_ref, w3_ref, w5_ref, w1_ref, x_ref, out_ref):
    # BN affine params, 1x1-conv weights and precomputed w1 moments: SMEM.
    g1, be1, m_w1, m_w1sq = scal_ref[0], scal_ref[1], scal_ref[2], scal_ref[3]
    w2, g2, be2 = scal_ref[4], scal_ref[5], scal_ref[6]
    g3, be3 = scal_ref[7], scal_ref[8]
    w4, g4, be4 = scal_ref[9], scal_ref[10], scal_ref[11]
    w41, g41, be41 = scal_ref[12], scal_ref[13], scal_ref[14]
    g5, be5 = scal_ref[15], scal_ref[16]
    w6, g6, be6 = scal_ref[17], scal_ref[18], scal_ref[19]

    x = x_ref[...]                                     # (N, 1)

    # conv_0 / bn_0 / relu_0 produce x_0, which the module never uses: skipped.

    # conv_1: ConvTranspose1d on a length-1 input == outer product (VPU).
    # bn_1 moments factorized through the outer product; only the (N,1) input
    # column is reduced here.  Conv bias cancels against the batch mean.
    inv_n = 1.0 / x.size
    mean_x = jnp.sum(x, keepdims=True) * inv_n         # (1,1)
    ex2_x = jnp.sum(x * x, keepdims=True) * inv_n      # (1,1)
    mean1 = mean_x * m_w1
    var1 = jnp.maximum(ex2_x * m_w1sq - mean1 * mean1, 0.0)
    scale1 = g1 * jax.lax.rsqrt(var1 + EPS)
    bias1 = be1 - mean1 * scale1
    x1 = jnp.maximum((x * scale1) * w1_ref[...] + bias1, 0.0)    # (N, K1)

    # conv_2: 1x1 conv folded into bn_2 (+ relu_2).
    x2 = _conv1x1_bn(x1, w2, g2, be2)

    # conv_3: ConvTranspose1d (K1 -> L3) as shifted accumulates, bn_3 + relu_3.
    x3 = _bn_relu(_conv_transpose(x2, w3_ref), g3, be3)

    # conv_4 / conv_4_1: 1x1 convs folded into their BNs (+ ReLUs).
    x4 = _conv1x1_bn(x3, w4, g4, be4)
    x41 = _conv1x1_bn(x4, w41, g41, be41)

    # conv_5: ConvTranspose1d (L3 -> T) as shifted accumulates, bn_5 + relu_5.
    x5 = _bn_relu(_conv_transpose(x41, w5_ref), g5, be5)

    # conv_6: 1x1 conv folded into bn_6 (no ReLU), then sigmoid (EUP exp).
    x6 = _conv1x1_bn(x5, w6, g6, be6, relu=False)
    out_ref[...] = 1.0 / (1.0 + jnp.exp(-x6))


# ---------------------------------------------------------------------------
# Parameter setup / one-time packing (hoisted out of the jitted forward)
# ---------------------------------------------------------------------------
def init_params(T, key):
    """Deterministic synthetic parameters matching the PyTorch module shapes."""
    K1 = int(math.ceil(T / 4))
    L3 = int(math.ceil(T / 2))
    K3 = L3 - K1 + 1
    K5 = T - L3 + 1

    ks = jax.random.split(key, 28)

    def s(k):
        return jax.random.normal(k, (), dtype=jnp.float32) * 0.5

    p = {
        "w1": jax.random.normal(ks[0], (K1,), jnp.float32) * 0.5, "b1": s(ks[1]),
        "w3": jax.random.normal(ks[2], (K3,), jnp.float32) * 0.5, "b3": s(ks[3]),
        "w5": jax.random.normal(ks[4], (K5,), jnp.float32) * 0.5, "b5": s(ks[5]),
        "w2": s(ks[6]), "b2": s(ks[7]),
        "w4": s(ks[8]), "b4": s(ks[9]),
        "w41": s(ks[10]), "b41": s(ks[11]),
        "w6": s(ks[12]), "b6": s(ks[13]),
    }
    # BN affine params (randomized around the PyTorch default gamma=1, beta=0
    # so the folding paths are actually exercised by the check).
    for i, nm in enumerate(("1", "2", "3", "4", "41", "5", "6")):
        p["g" + nm] = 1.0 + 0.1 * jax.random.normal(ks[14 + i], (), jnp.float32)
        p["be" + nm] = 0.1 * jax.random.normal(ks[21 + i], (), jnp.float32)
    return p


def pack_params(params):
    """One-time packing into kernel-ready arrays (NOT per-forward work)."""
    w1 = params["w1"].astype(jnp.float32)
    scalars = jnp.stack([
        params["g1"], params["be1"], jnp.mean(w1), jnp.mean(w1 * w1),
        params["w2"], params["g2"], params["be2"],
        params["g3"], params["be3"],
        params["w4"], params["g4"], params["be4"],
        params["w41"], params["g41"], params["be41"],
        params["g5"], params["be5"],
        params["w6"], params["g6"], params["be6"],
    ]).astype(jnp.float32)
    return {
        "scalars": scalars,                    # (20,)  -> SMEM
        "w1row": w1.reshape(1, -1),            # (1,K1) -> VMEM (resident)
        "w3": params["w3"].astype(jnp.float32),  # (K3,) -> SMEM
        "w5": params["w5"].astype(jnp.float32),  # (K5,) -> SMEM
    }


# ---------------------------------------------------------------------------
# Forward wrapper
# ---------------------------------------------------------------------------
@functools.partial(jax.jit, static_argnames=("T",))
def cnn_time_forward(x, packed, T):
    """x: (B, N) batch of independent inputs, or (N,) for a single forward."""
    single = x.ndim == 1
    if single:
        x = x[None, :]
    B, N = x.shape
    K1 = packed["w1row"].shape[1]
    K3 = packed["w3"].shape[0]
    K5 = packed["w5"].shape[0]
    L3 = K1 + K3 - 1
    assert L3 + K5 - 1 == T, "packed params inconsistent with T"

    x3d = x.reshape(B, N, 1).astype(jnp.float32)

    # Advisory cost estimate (kernel is launch/latency bound at these sizes).
    flops = int(B * (2 * N * (K1 + L3 * K3 + T * K5) + 40 * N * T))
    transcendentals = int(B * (7 + N * T))
    bytes_accessed = int(4 * (B * N + B * N * T + 20 + K1 + K3 + K5))

    out = pl.pallas_call(
        cnn_time_kernel,
        grid=(B,),
        out_shape=jax.ShapeDtypeStruct((B, N, T), jnp.float32),
        in_specs=[
            pl.BlockSpec(memory_space=pltpu.MemorySpace.SMEM),   # scalars (20,)
            pl.BlockSpec(memory_space=pltpu.MemorySpace.SMEM),   # w3 (K3,)
            pl.BlockSpec(memory_space=pltpu.MemorySpace.SMEM),   # w5 (K5,)
            pl.BlockSpec((1, K1), lambda b: (0, 0)),             # w1 row (resident)
            pl.BlockSpec((None, N, 1), lambda b: (b, 0, 0)),     # x, one sample/step
        ],
        out_specs=pl.BlockSpec((None, N, T), lambda b: (b, 0, 0)),
        compiler_params=pltpu.CompilerParams(
            dimension_semantics=("parallel",)),
        cost_estimate=pl.CostEstimate(
            flops=flops, transcendentals=transcendentals,
            bytes_accessed=bytes_accessed),
    )(packed["scalars"], packed["w3"], packed["w5"], packed["w1row"], x3d)

    return out[0] if single else out


# ---------------------------------------------------------------------------
# Pure-JAX reference (mirrors the PyTorch forward) for correctness checking
# ---------------------------------------------------------------------------
def _band_matrix(w, l_in):
    k = w.shape[0]
    l_out = l_in + k - 1
    i = jnp.arange(l_in)[:, None]
    l = jnp.arange(l_out)[None, :]
    d = l - i
    return jnp.where((d >= 0) & (d < k), w[jnp.clip(d, 0, k - 1)], 0.0).astype(jnp.float32)


def reference_single(x_nodes, params):
    x = x_nodes.reshape(-1, 1).astype(jnp.float32)

    def bn(y, g, b):
        m = jnp.mean(y)
        v = jnp.mean((y - m) ** 2)
        return (y - m) / jnp.sqrt(v + EPS) * g + b

    def convT(xin, w, b):
        return xin @ _band_matrix(w, xin.shape[1]) + b

    relu = jax.nn.relu
    x1 = relu(bn(convT(x, params["w1"], params["b1"]), params["g1"], params["be1"]))
    x2 = relu(bn(x1 * params["w2"] + params["b2"], params["g2"], params["be2"]))
    x3 = relu(bn(convT(x2, params["w3"], params["b3"]), params["g3"], params["be3"]))
    x4 = relu(bn(x3 * params["w4"] + params["b4"], params["g4"], params["be4"]))
    x41 = relu(bn(x4 * params["w41"] + params["b41"], params["g41"], params["be41"]))
    x5 = relu(bn(convT(x41, params["w5"], params["b5"]), params["g5"], params["be5"]))
    x6 = bn(x5 * params["w6"] + params["b6"], params["g6"], params["be6"])
    return jax.nn.sigmoid(x6)


if __name__ == "__main__":
    key = jax.random.PRNGKey(0)
    k_p, k_x, k_p2, k_x2 = jax.random.split(key, 4)

    # Primary config: T=16, N=8 nodes, B=4 independent forwards batched into
    # one pallas_call via the parallel grid axis.
    T, N, B = 16, 8, 4
    params = init_params(T, k_p)
    packed = pack_params(params)
    x = jax.random.normal(k_x, (B, N), dtype=jnp.float32)

    out = jax.block_until_ready(cnn_time_forward(x, packed, T=T))
    ref = jax.vmap(lambda xb: reference_single(xb, params))(x)
    np.testing.assert_allclose(np.asarray(out), np.asarray(ref),
                               rtol=2e-3, atol=2e-4)
    assert out.shape == (B, N, T)

    # Single-sample path (module-equivalent interface: x of shape (N,)).
    out1 = jax.block_until_ready(cnn_time_forward(x[0], packed, T=T))
    np.testing.assert_allclose(np.asarray(out1), np.asarray(ref[0]),
                               rtol=2e-3, atol=2e-4)
    assert out1.shape == (N, T)

    # Secondary config exercising the longer shifted-accumulate convs.
    T2, N2, B2 = 64, 16, 2
    params2 = init_params(T2, k_p2)
    packed2 = pack_params(params2)
    x2 = jax.random.normal(k_x2, (B2, N2), dtype=jnp.float32)
    out2 = jax.block_until_ready(cnn_time_forward(x2, packed2, T=T2))
    ref2 = jax.vmap(lambda xb: reference_single(xb, params2))(x2)
    np.testing.assert_allclose(np.asarray(out2), np.asarray(ref2),
                               rtol=2e-3, atol=2e-4)
    assert out2.shape == (B2, N2, T2)

    print("KERNEL_OK")
</pallas_src>

<mosaic_0001>
module attributes {stable_mosaic.version = 11 : i64} {
  func.func @cnn_time_kernel(%arg0: i32, %arg1: memref<20xf32, #tpu.memory_space<smem>>, %arg2: memref<5xf32, #tpu.memory_space<smem>>, %arg3: memref<9xf32, #tpu.memory_space<smem>>, %arg4: memref<1x4xf32, #tpu.memory_space<vmem>>, %arg5: memref<1x8x1xf32, #tpu.memory_space<vmem>>, %arg6: memref<1x8x16xf32, #tpu.memory_space<vmem>>) attributes {dimension_semantics = [#tpu.dimension_semantics<parallel>], iteration_bounds = array<i64: 4>, scalar_prefetch = 0 : i64, scratch_operands = 0 : i64, tpu.core_type = #tpu.core_type<tc>, window_params = [{transform_indices = @transform_0, window_bounds = array<i64: 20>}, {transform_indices = @transform_1, window_bounds = array<i64: 5>}, {transform_indices = @transform_2, window_bounds = array<i64: 9>}, {pipeline_mode = #tpu.pipeline_mode<synchronous>, transform_indices = @transform_3, window_bounds = array<i64: 1, 4>}, {transform_indices = @transform_4, window_bounds = array<i64: 1, 8, 1>}, {transform_indices = @transform_5, window_bounds = array<i64: 1, 8, 16>}]} {
    %c0 = arith.constant 0 : index
    %0 = memref.load %arg1[%c0] : memref<20xf32, #tpu.memory_space<smem>>
    %c1 = arith.constant 1 : index
    %1 = memref.load %arg1[%c1] : memref<20xf32, #tpu.memory_space<smem>>
    %c2 = arith.constant 2 : index
    %2 = memref.load %arg1[%c2] : memref<20xf32, #tpu.memory_space<smem>>
    %c3 = arith.constant 3 : index
    %3 = memref.load %arg1[%c3] : memref<20xf32, #tpu.memory_space<smem>>
    %c4 = arith.constant 4 : index
    %4 = memref.load %arg1[%c4] : memref<20xf32, #tpu.memory_space<smem>>
    %c5 = arith.constant 5 : index
    %5 = memref.load %arg1[%c5] : memref<20xf32, #tpu.memory_space<smem>>
    %c6 = arith.constant 6 : index
    %6 = memref.load %arg1[%c6] : memref<20xf32, #tpu.memory_space<smem>>
    %c7 = arith.constant 7 : index
    %7 = memref.load %arg1[%c7] : memref<20xf32, #tpu.memory_space<smem>>
    %c8 = arith.constant 8 : index
    %8 = memref.load %arg1[%c8] : memref<20xf32, #tpu.memory_space<smem>>
    %c9 = arith.constant 9 : index
    %9 = memref.load %arg1[%c9] : memref<20xf32, #tpu.memory_space<smem>>
    %c10 = arith.constant 10 : index
    %10 = memref.load %arg1[%c10] : memref<20xf32, #tpu.memory_space<smem>>
    %c11 = arith.constant 11 : index
    %11 = memref.load %arg1[%c11] : memref<20xf32, #tpu.memory_space<smem>>
    %c12 = arith.constant 12 : index
    %12 = memref.load %arg1[%c12] : memref<20xf32, #tpu.memory_space<smem>>
    %c13 = arith.constant 13 : index
    %13 = memref.load %arg1[%c13] : memref<20xf32, #tpu.memory_space<smem>>
    %c14 = arith.constant 14 : index
    %14 = memref.load %arg1[%c14] : memref<20xf32, #tpu.memory_space<smem>>
    %c15 = arith.constant 15 : index
    %15 = memref.load %arg1[%c15] : memref<20xf32, #tpu.memory_space<smem>>
    %c16 = arith.constant 16 : index
    %16 = memref.load %arg1[%c16] : memref<20xf32, #tpu.memory_space<smem>>
    %c17 = arith.constant 17 : index
    %17 = memref.load %arg1[%c17] : memref<20xf32, #tpu.memory_space<smem>>
    %c18 = arith.constant 18 : index
    %18 = memref.load %arg1[%c18] : memref<20xf32, #tpu.memory_space<smem>>
    %c19 = arith.constant 19 : index
    %19 = memref.load %arg1[%c19] : memref<20xf32, #tpu.memory_space<smem>>
    %c0_0 = arith.constant 0 : index
    %c0_1 = arith.constant 0 : index
    %c0_2 = arith.constant 0 : index
    %20 = vector.load %arg5[%c0_0, %c0_1, %c0_2] : memref<1x8x1xf32, #tpu.memory_space<vmem>>, vector<1x8x1xf32>
    %21 = vector.shape_cast %20 : vector<1x8x1xf32> to vector<8x1xf32>
    %22 = vector.shape_cast %21 : vector<8x1xf32> to vector<1x8x1xf32>
    %cst = arith.constant dense<0.000000e+00> : vector<1xf32>
    %23 = vector.multi_reduction <add>, %22, %cst [1, 2] : vector<1x8x1xf32> to vector<1xf32>
    %24 = vector.shape_cast %23 : vector<1xf32> to vector<1x1x1xf32>
    %25 = vector.extract %24[0, 0, 0] : f32 from vector<1x1x1xf32>
    %26 = vector.broadcast %25 : f32 to vector<1x1xf32>
    %cst_3 = arith.constant 1.250000e-01 : f32
    %27 = vector.broadcast %cst_3 : f32 to vector<1x1xf32>
    %28 = arith.mulf %26, %27 : vector<1x1xf32>
    %29 = arith.mulf %21, %21 : vector<8x1xf32>
    %30 = vector.shape_cast %29 : vector<8x1xf32> to vector<1x8x1xf32>
    %cst_4 = arith.constant dense<0.000000e+00> : vector<1xf32>
    %31 = vector.multi_reduction <add>, %30, %cst_4 [1, 2] : vector<1x8x1xf32> to vector<1xf32>
    %32 = vector.shape_cast %31 : vector<1xf32> to vector<1x1x1xf32>
    %33 = vector.extract %32[0, 0, 0] : f32 from vector<1x1x1xf32>
    %34 = vector.broadcast %33 : f32 to vector<1x1xf32>
    %cst_5 = arith.constant 1.250000e-01 : f32
    %35 = vector.broadcast %cst_5 : f32 to vector<1x1xf32>
    %36 = arith.mulf %34, %35 : vector<1x1xf32>
    %37 = vector.broadcast %2 : f32 to vector<1x1xf32>
    %38 = arith.mulf %28, %37 : vector<1x1xf32>
    %39 = vector.broadcast %3 : f32 to vector<1x1xf32>
    %40 = arith.mulf %36, %39 : vector<1x1xf32>
    %41 = arith.mulf %38, %38 : vector<1x1xf32>
    %42 = arith.subf %40, %41 : vector<1x1xf32>
    %cst_6 = arith.constant 0.000000e+00 : f32
    %43 = vector.broadcast %cst_6 : f32 to vector<1x1xf32>
    %44 = arith.maximumf %42, %43 : vector<1x1xf32>
    %cst_7 = arith.constant 9.99999974E-6 : f32
    %45 = vector.broadcast %cst_7 : f32 to vector<1x1xf32>
    %46 = arith.addf %44, %45 : vector<1x1xf32>
    %47 = math.rsqrt %46 : vector<1x1xf32>
    %48 = vector.broadcast %0 : f32 to vector<1x1xf32>
    %49 = arith.mulf %48, %47 : vector<1x1xf32>
    %50 = arith.mulf %38, %49 : vector<1x1xf32>
    %51 = vector.broadcast %1 : f32 to vector<1x1xf32>
    %52 = arith.subf %51, %50 : vector<1x1xf32>
    %53 = vector.broadcast %49 : vector<1x1xf32> to vector<8x1xf32>
    %54 = arith.mulf %21, %53 : vector<8x1xf32>
    %c0_8 = arith.constant 0 : index
    %c0_9 = arith.constant 0 : index
    %55 = vector.load %arg4[%c0_8, %c0_9] : memref<1x4xf32, #tpu.memory_space<vmem>>, vector<1x4xf32>
    %56 = vector.broadcast %54 : vector<8x1xf32> to vector<8x4xf32>
    %57 = vector.broadcast %55 : vector<1x4xf32> to vector<8x4xf32>
    %58 = arith.mulf %56, %57 : vector<8x4xf32>
    %59 = vector.broadcast %52 : vector<1x1xf32> to vector<8x4xf32>
    %60 = arith.addf %58, %59 : vector<8x4xf32>
    %cst_10 = arith.constant 0.000000e+00 : f32
    %61 = vector.broadcast %cst_10 : f32 to vector<8x4xf32>
    %62 = arith.maximumf %60, %61 : vector<8x4xf32>
    %63 = vector.shape_cast %62 : vector<8x4xf32> to vector<1x8x4xf32>
    %cst_11 = arith.constant dense<0.000000e+00> : vector<1xf32>
    %64 = vector.multi_reduction <add>, %63, %cst_11 [1, 2] : vector<1x8x4xf32> to vector<1xf32>
    %65 = vector.shape_cast %64 : vector<1xf32> to vector<1x1x1xf32>
    %66 = vector.extract %65[0, 0, 0] : f32 from vector<1x1x1xf32>
    %67 = vector.broadcast %66 : f32 to vector<1x1xf32>
    %cst_12 = arith.constant 3.125000e-02 : f32
    %68 = vector.broadcast %cst_12 : f32 to vector<1x1xf32>
    %69 = arith.mulf %67, %68 : vector<1x1xf32>
    %70 = arith.mulf %62, %62 : vector<8x4xf32>
    %71 = vector.shape_cast %70 : vector<8x4xf32> to vector<1x8x4xf32>
    %cst_13 = arith.constant dense<0.000000e+00> : vector<1xf32>
    %72 = vector.multi_reduction <add>, %71, %cst_13 [1, 2] : vector<1x8x4xf32> to vector<1xf32>
    %73 = vector.shape_cast %72 : vector<1xf32> to vector<1x1x1xf32>
    %74 = vector.extract %73[0, 0, 0] : f32 from vector<1x1x1xf32>
    %75 = vector.broadcast %74 : f32 to vector<1x1xf32>
    %cst_14 = arith.constant 3.125000e-02 : f32
    %76 = vector.broadcast %cst_14 : f32 to vector<1x1xf32>
    %77 = arith.mulf %75, %76 : vector<1x1xf32>
    %78 = arith.mulf %69, %69 : vector<1x1xf32>
    %79 = arith.subf %77, %78 : vector<1x1xf32>
    %cst_15 = arith.constant 0.000000e+00 : f32
    %80 = vector.broadcast %cst_15 : f32 to vector<1x1xf32>
    %81 = arith.maximumf %79, %80 : vector<1x1xf32>
    %82 = arith.mulf %5, %4 : f32
    %83 = arith.mulf %4, %4 : f32
    %84 = vector.broadcast %83 : f32 to vector<1x1xf32>
    %85 = arith.mulf %84, %81 : vector<1x1xf32>
    %cst_16 = arith.constant 9.99999974E-6 : f32
    %86 = vector.broadcast %cst_16 : f32 to vector<1x1xf32>
    %87 = arith.addf %85, %86 : vector<1x1xf32>
    %88 = math.rsqrt %87 : vector<1x1xf32>
    %89 = vector.broadcast %82 : f32 to vector<1x1xf32>
    %90 = arith.mulf %89, %88 : vector<1x1xf32>
    %91 = arith.mulf %69, %90 : vector<1x1xf32>
    %92 = vector.broadcast %6 : f32 to vector<1x1xf32>
    %93 = arith.subf %92, %91 : vector<1x1xf32>
    %94 = vector.broadcast %90 : vector<1x1xf32> to vector<8x4xf32>
    %95 = arith.mulf %62, %94 : vector<8x4xf32>
    %96 = vector.broadcast %93 : vector<1x1xf32> to vector<8x4xf32>
    %97 = arith.addf %95, %96 : vector<8x4xf32>
    %cst_17 = arith.constant 0.000000e+00 : f32
    %98 = vector.broadcast %cst_17 : f32 to vector<8x4xf32>
    %99 = arith.maximumf %97, %98 : vector<8x4xf32>
    %cst_18 = arith.constant 0.000000e+00 : f32
    %100 = vector.broadcast %cst_18 : f32 to vector<8x4xf32>
    %101 = tpu.concatenate %100, %99, %100 in 1 : vector<8x4xf32>, vector<8x4xf32>, vector<8x4xf32> -> vector<8x12xf32>
    %102 = vector.extract_strided_slice %101 {offsets = [0, 4], sizes = [8, 8], strides = [1, 1]} : vector<8x12xf32> to vector<8x8xf32>
    %c0_19 = arith.constant 0 : index
    %103 = memref.load %arg2[%c0_19] : memref<5xf32, #tpu.memory_space<smem>>
    %104 = vector.broadcast %103 : f32 to vector<8x8xf32>
    %105 = arith.mulf %102, %104 : vector<8x8xf32>
    %106 = vector.extract_strided_slice %101 {offsets = [0, 3], sizes = [8, 8], strides = [1, 1]} : vector<8x12xf32> to vector<8x8xf32>
    %c1_20 = arith.constant 1 : index
    %107 = memref.load %arg2[%c1_20] : memref<5xf32, #tpu.memory_space<smem>>
    %108 = vector.broadcast %107 : f32 to vector<8x8xf32>
    %109 = arith.mulf %106, %108 : vector<8x8xf32>
    %110 = arith.addf %105, %109 : vector<8x8xf32>
    %111 = vector.extract_strided_slice %101 {offsets = [0, 2], sizes = [8, 8], strides = [1, 1]} : vector<8x12xf32> to vector<8x8xf32>
    %c2_21 = arith.constant 2 : index
    %112 = memref.load %arg2[%c2_21] : memref<5xf32, #tpu.memory_space<smem>>
    %113 = vector.broadcast %112 : f32 to vector<8x8xf32>
    %114 = arith.mulf %111, %113 : vector<8x8xf32>
    %115 = arith.addf %110, %114 : vector<8x8xf32>
    %116 = vector.extract_strided_slice %101 {offsets = [0, 1], sizes = [8, 8], strides = [1, 1]} : vector<8x12xf32> to vector<8x8xf32>
    %c3_22 = arith.constant 3 : index
    %117 = memref.load %arg2[%c3_22] : memref<5xf32, #tpu.memory_space<smem>>
    %118 = vector.broadcast %117 : f32 to vector<8x8xf32>
    %119 = arith.mulf %116, %118 : vector<8x8xf32>
    %120 = arith.addf %115, %119 : vector<8x8xf32>
    %121 = vector.extract_strided_slice %101 {offsets = [0, 0], sizes = [8, 8], strides = [1, 1]} : vector<8x12xf32> to vector<8x8xf32>
    %c4_23 = arith.constant 4 : index
    %122 = memref.load %arg2[%c4_23] : memref<5xf32, #tpu.memory_space<smem>>
    %123 = vector.broadcast %122 : f32 to vector<8x8xf32>
    %124 = arith.mulf %121, %123 : vector<8x8xf32>
    %125 = arith.addf %120, %124 : vector<8x8xf32>
    %126 = vector.shape_cast %125 : vector<8x8xf32> to vector<1x8x8xf32>
    %cst_24 = arith.constant dense<0.000000e+00> : vector<1xf32>
    %127 = vector.multi_reduction <add>, %126, %cst_24 [1, 2] : vector<1x8x8xf32> to vector<1xf32>
    %128 = vector.shape_cast %127 : vector<1xf32> to vector<1x1x1xf32>
    %129 = vector.extract %128[0, 0, 0] : f32 from vector<1x1x1xf32>
    %130 = vector.broadcast %129 : f32 to vector<1x1xf32>
    %cst_25 = arith.constant 1.562500e-02 : f32
    %131 = vector.broadcast %cst_25 : f32 to vector<1x1xf32>
    %132 = arith.mulf %130, %131 : vector<1x1xf32>
    %133 = arith.mulf %125, %125 : vector<8x8xf32>
    %134 = vector.shape_cast %133 : vector<8x8xf32> to vector<1x8x8xf32>
    %cst_26 = arith.constant dense<0.000000e+00> : vector<1xf32>
    %135 = vector.multi_reduction <add>, %134, %cst_26 [1, 2] : vector<1x8x8xf32> to vector<1xf32>
    %136 = vector.shape_cast %135 : vector<1xf32> to vector<1x1x1xf32>
    %137 = vector.extract %136[0, 0, 0] : f32 from vector<1x1x1xf32>
    %138 = vector.broadcast %137 : f32 to vector<1x1xf32>
    %cst_27 = arith.constant 1.562500e-02 : f32
    %139 = vector.broadcast %cst_27 : f32 to vector<1x1xf32>
    %140 = arith.mulf %138, %139 : vector<1x1xf32>
    %141 = arith.mulf %132, %132 : vector<1x1xf32>
    %142 = arith.subf %140, %141 : vector<1x1xf32>
    %cst_28 = arith.constant 0.000000e+00 : f32
    %143 = vector.broadcast %cst_28 : f32 to vector<1x1xf32>
    %144 = arith.maximumf %142, %143 : vector<1x1xf32>
    %cst_29 = arith.constant 9.99999974E-6 : f32
    %145 = vector.broadcast %cst_29 : f32 to vector<1x1xf32>
    %146 = arith.addf %144, %145 : vector<1x1xf32>
    %147 = math.rsqrt %146 : vector<1x1xf32>
    %148 = vector.broadcast %7 : f32 to vector<1x1xf32>
    %149 = arith.mulf %148, %147 : vector<1x1xf32>
    %150 = arith.mulf %132, %149 : vector<1x1xf32>
    %151 = vector.broadcast %8 : f32 to vector<1x1xf32>
    %152 = arith.subf %151, %150 : vector<1x1xf32>
    %153 = vector.broadcast %149 : vector<1x1xf32> to vector<8x8xf32>
    %154 = arith.mulf %125, %153 : vector<8x8xf32>
    %155 = vector.broadcast %152 : vector<1x1xf32> to vector<8x8xf32>
    %156 = arith.addf %154, %155 : vector<8x8xf32>
    %cst_30 = arith.constant 0.000000e+00 : f32
    %157 = vector.broadcast %cst_30 : f32 to vector<8x8xf32>
    %158 = arith.maximumf %156, %157 : vector<8x8xf32>
    %159 = vector.shape_cast %158 : vector<8x8xf32> to vector<1x8x8xf32>
    %cst_31 = arith.constant dense<0.000000e+00> : vector<1xf32>
    %160 = vector.multi_reduction <add>, %159, %cst_31 [1, 2] : vector<1x8x8xf32> to vector<1xf32>
    %161 = vector.shape_cast %160 : vector<1xf32> to vector<1x1x1xf32>
    %162 = vector.extract %161[0, 0, 0] : f32 from vector<1x1x1xf32>
    %163 = vector.broadcast %162 : f32 to vector<1x1xf32>
    %cst_32 = arith.constant 1.562500e-02 : f32
    %164 = vector.broadcast %cst_32 : f32 to vector<1x1xf32>
    %165 = arith.mulf %163, %164 : vector<1x1xf32>
    %166 = arith.mulf %158, %158 : vector<8x8xf32>
    %167 = vector.shape_cast %166 : vector<8x8xf32> to vector<1x8x8xf32>
    %cst_33 = arith.constant dense<0.000000e+00> : vector<1xf32>
    %168 = vector.multi_reduction <add>, %167, %cst_33 [1, 2] : vector<1x8x8xf32> to vector<1xf32>
    %169 = vector.shape_cast %168 : vector<1xf32> to vector<1x1x1xf32>
    %170 = vector.extract %169[0, 0, 0] : f32 from vector<1x1x1xf32>
    %171 = vector.broadcast %170 : f32 to vector<1x1xf32>
    %cst_34 = arith.constant 1.562500e-02 : f32
    %172 = vector.broadcast %cst_34 : f32 to vector<1x1xf32>
    %173 = arith.mulf %171, %172 : vector<1x1xf32>
    %174 = arith.mulf %165, %165 : vector<1x1xf32>
    %175 = arith.subf %173, %174 : vector<1x1xf32>
    %cst_35 = arith.constant 0.000000e+00 : f32
    %176 = vector.broadcast %cst_35 : f32 to vector<1x1xf32>
    %177 = arith.maximumf %175, %176 : vector<1x1xf32>
    %178 = arith.mulf %10, %9 : f32
    %179 = arith.mulf %9, %9 : f32
    %180 = vector.broadcast %179 : f32 to vector<1x1xf32>
    %181 = arith.mulf %180, %177 : vector<1x1xf32>
    %cst_36 = arith.constant 9.99999974E-6 : f32
    %182 = vector.broadcast %cst_36 : f32 to vector<1x1xf32>
    %183 = arith.addf %181, %182 : vector<1x1xf32>
    %184 = math.rsqrt %183 : vector<1x1xf32>
    %185 = vector.broadcast %178 : f32 to vector<1x1xf32>
    %186 = arith.mulf %185, %184 : vector<1x1xf32>
    %187 = arith.mulf %165, %186 : vector<1x1xf32>
    %188 = vector.broadcast %11 : f32 to vector<1x1xf32>
    %189 = arith.subf %188, %187 : vector<1x1xf32>
    %190 = vector.broadcast %186 : vector<1x1xf32> to vector<8x8xf32>
    %191 = arith.mulf %158, %190 : vector<8x8xf32>
    %192 = vector.broadcast %189 : vector<1x1xf32> to vector<8x8xf32>
    %193 = arith.addf %191, %192 : vector<8x8xf32>
    %cst_37 = arith.constant 0.000000e+00 : f32
    %194 = vector.broadcast %cst_37 : f32 to vector<8x8xf32>
    %195 = arith.maximumf %193, %194 : vector<8x8xf32>
    %196 = vector.shape_cast %195 : vector<8x8xf32> to vector<1x8x8xf32>
    %cst_38 = arith.constant dense<0.000000e+00> : vector<1xf32>
    %197 = vector.multi_reduction <add>, %196, %cst_38 [1, 2] : vector<1x8x8xf32> to vector<1xf32>
    %198 = vector.shape_cast %197 : vector<1xf32> to vector<1x1x1xf32>
    %199 = vector.extract %198[0, 0, 0] : f32 from vector<1x1x1xf32>
    %200 = vector.broadcast %199 : f32 to vector<1x1xf32>
    %cst_39 = arith.constant 1.562500e-02 : f32
    %201 = vector.broadcast %cst_39 : f32 to vector<1x1xf32>
    %202 = arith.mulf %200, %201 : vector<1x1xf32>
    %203 = arith.mulf %195, %195 : vector<8x8xf32>
    %204 = vector.shape_cast %203 : vector<8x8xf32> to vector<1x8x8xf32>
    %cst_40 = arith.constant dense<0.000000e+00> : vector<1xf32>
    %205 = vector.multi_reduction <add>, %204, %cst_40 [1, 2] : vector<1x8x8xf32> to vector<1xf32>
    %206 = vector.shape_cast %205 : vector<1xf32> to vector<1x1x1xf32>
    %207 = vector.extract %206[0, 0, 0] : f32 from vector<1x1x1xf32>
    %208 = vector.broadcast %207 : f32 to vector<1x1xf32>
    %cst_41 = arith.constant 1.562500e-02 : f32
    %209 = vector.broadcast %cst_41 : f32 to vector<1x1xf32>
    %210 = arith.mulf %208, %209 : vector<1x1xf32>
    %211 = arith.mulf %202, %202 : vector<1x1xf32>
    %212 = arith.subf %210, %211 : vector<1x1xf32>
    %cst_42 = arith.constant 0.000000e+00 : f32
    %213 = vector.broadcast %cst_42 : f32 to vector<1x1xf32>
    %214 = arith.maximumf %212, %213 : vector<1x1xf32>
    %215 = arith.mulf %13, %12 : f32
    %216 = arith.mulf %12, %12 : f32
    %217 = vector.broadcast %216 : f32 to vector<1x1xf32>
    %218 = arith.mulf %217, %214 : vector<1x1xf32>
    %cst_43 = arith.constant 9.99999974E-6 : f32
    %219 = vector.broadcast %cst_43 : f32 to vector<1x1xf32>
    %220 = arith.addf %218, %219 : vector<1x1xf32>
    %221 = math.rsqrt %220 : vector<1x1xf32>
    %222 = vector.broadcast %215 : f32 to vector<1x1xf32>
    %223 = arith.mulf %222, %221 : vector<1x1xf32>
    %224 = arith.mulf %202, %223 : vector<1x1xf32>
    %225 = vector.broadcast %14 : f32 to vector<1x1xf32>
    %226 = arith.subf %225, %224 : vector<1x1xf32>
    %227 = vector.broadcast %223 : vector<1x1xf32> to vector<8x8xf32>
    %228 = arith.mulf %195, %227 : vector<8x8xf32>
    %229 = vector.broadcast %226 : vector<1x1xf32> to vector<8x8xf32>
    %230 = arith.addf %228, %229 : vector<8x8xf32>
    %cst_44 = arith.constant 0.000000e+00 : f32
    %231 = vector.broadcast %cst_44 : f32 to vector<8x8xf32>
    %232 = arith.maximumf %230, %231 : vector<8x8xf32>
    %cst_45 = arith.constant 0.000000e+00 : f32
    %233 = vector.broadcast %cst_45 : f32 to vector<8x8xf32>
    %234 = tpu.concatenate %233, %232, %233 in 1 : vector<8x8xf32>, vector<8x8xf32>, vector<8x8xf32> -> vector<8x24xf32>
    %235 = vector.extract_strided_slice %234 {offsets = [0, 8], sizes = [8, 16], strides = [1, 1]} : vector<8x24xf32> to vector<8x16xf32>
    %c0_46 = arith.constant 0 : index
    %236 = memref.load %arg3[%c0_46] : memref<9xf32, #tpu.memory_space<smem>>
    %237 = vector.broadcast %236 : f32 to vector<8x16xf32>
    %238 = arith.mulf %235, %237 : vector<8x16xf32>
    %239 = vector.extract_strided_slice %234 {offsets = [0, 7], sizes = [8, 16], strides = [1, 1]} : vector<8x24xf32> to vector<8x16xf32>
    %c1_47 = arith.constant 1 : index
    %240 = memref.load %arg3[%c1_47] : memref<9xf32, #tpu.memory_space<smem>>
    %241 = vector.broadcast %240 : f32 to vector<8x16xf32>
    %242 = arith.mulf %239, %241 : vector<8x16xf32>
    %243 = arith.addf %238, %242 : vector<8x16xf32>
    %244 = vector.extract_strided_slice %234 {offsets = [0, 6], sizes = [8, 16], strides = [1, 1]} : vector<8x24xf32> to vector<8x16xf32>
    %c2_48 = arith.constant 2 : index
    %245 = memref.load %arg3[%c2_48] : memref<9xf32, #tpu.memory_space<smem>>
    %246 = vector.broadcast %245 : f32 to vector<8x16xf32>
    %247 = arith.mulf %244, %246 : vector<8x16xf32>
    %248 = arith.addf %243, %247 : vector<8x16xf32>
    %249 = vector.extract_strided_slice %234 {offsets = [0, 5], sizes = [8, 16], strides = [1, 1]} : vector<8x24xf32> to vector<8x16xf32>
    %c3_49 = arith.constant 3 : index
    %250 = memref.load %arg3[%c3_49] : memref<9xf32, #tpu.memory_space<smem>>
    %251 = vector.broadcast %250 : f32 to vector<8x16xf32>
    %252 = arith.mulf %249, %251 : vector<8x16xf32>
    %253 = arith.addf %248, %252 : vector<8x16xf32>
    %254 = vector.extract_strided_slice %234 {offsets = [0, 4], sizes = [8, 16], strides = [1, 1]} : vector<8x24xf32> to vector<8x16xf32>
    %c4_50 = arith.constant 4 : index
    %255 = memref.load %arg3[%c4_50] : memref<9xf32, #tpu.memory_space<smem>>
    %256 = vector.broadcast %255 : f32 to vector<8x16xf32>
    %257 = arith.mulf %254, %256 : vector<8x16xf32>
    %258 = arith.addf %253, %257 : vector<8x16xf32>
    %259 = vector.extract_strided_slice %234 {offsets = [0, 3], sizes = [8, 16], strides = [1, 1]} : vector<8x24xf32> to vector<8x16xf32>
    %c5_51 = arith.constant 5 : index
    %260 = memref.load %arg3[%c5_51] : memref<9xf32, #tpu.memory_space<smem>>
    %261 = vector.broadcast %260 : f32 to vector<8x16xf32>
    %262 = arith.mulf %259, %261 : vector<8x16xf32>
    %263 = arith.addf %258, %262 : vector<8x16xf32>
    %264 = vector.extract_strided_slice %234 {offsets = [0, 2], sizes = [8, 16], strides = [1, 1]} : vector<8x24xf32> to vector<8x16xf32>
    %c6_52 = arith.constant 6 : index
    %265 = memref.load %arg3[%c6_52] : memref<9xf32, #tpu.memory_space<smem>>
    %266 = vector.broadcast %265 : f32 to vector<8x16xf32>
    %267 = arith.mulf %264, %266 : vector<8x16xf32>
    %268 = arith.addf %263, %267 : vector<8x16xf32>
    %269 = vector.extract_strided_slice %234 {offsets = [0, 1], sizes = [8, 16], strides = [1, 1]} : vector<8x24xf32> to vector<8x16xf32>
    %c7_53 = arith.constant 7 : index
    %270 = memref.load %arg3[%c7_53] : memref<9xf32, #tpu.memory_space<smem>>
    %271 = vector.broadcast %270 : f32 to vector<8x16xf32>
    %272 = arith.mulf %269, %271 : vector<8x16xf32>
    %273 = arith.addf %268, %272 : vector<8x16xf32>
    %274 = vector.extract_strided_slice %234 {offsets = [0, 0], sizes = [8, 16], strides = [1, 1]} : vector<8x24xf32> to vector<8x16xf32>
    %c8_54 = arith.constant 8 : index
    %275 = memref.load %arg3[%c8_54] : memref<9xf32, #tpu.memory_space<smem>>
    %276 = vector.broadcast %275 : f32 to vector<8x16xf32>
    %277 = arith.mulf %274, %276 : vector<8x16xf32>
    %278 = arith.addf %273, %277 : vector<8x16xf32>
    %279 = vector.shape_cast %278 : vector<8x16xf32> to vector<1x8x16xf32>
    %cst_55 = arith.constant dense<0.000000e+00> : vector<1xf32>
    %280 = vector.multi_reduction <add>, %279, %cst_55 [1, 2] : vector<1x8x16xf32> to vector<1xf32>
    %281 = vector.shape_cast %280 : vector<1xf32> to vector<1x1x1xf32>
    %282 = vector.extract %281[0, 0, 0] : f32 from vector<1x1x1xf32>
    %283 = vector.broadcast %282 : f32 to vector<1x1xf32>
    %cst_56 = arith.constant 7.812500e-03 : f32
    %284 = vector.broadcast %cst_56 : f32 to vector<1x1xf32>
    %285 = arith.mulf %283, %284 : vector<1x1xf32>
    %286 = arith.mulf %278, %278 : vector<8x16xf32>
    %287 = vector.shape_cast %286 : vector<8x16xf32> to vector<1x8x16xf32>
    %cst_57 = arith.constant dense<0.000000e+00> : vector<1xf32>
    %288 = vector.multi_reduction <add>, %287, %cst_57 [1, 2] : vector<1x8x16xf32> to vector<1xf32>
    %289 = vector.shape_cast %288 : vector<1xf32> to vector<1x1x1xf32>
    %290 = vector.extract %289[0, 0, 0] : f32 from vector<1x1x1xf32>
    %291 = vector.broadcast %290 : f32 to vector<1x1xf32>
    %cst_58 = arith.constant 7.812500e-03 : f32
    %292 = vector.broadcast %cst_58 : f32 to vector<1x1xf32>
    %293 = arith.mulf %291, %292 : vector<1x1xf32>
    %294 = arith.mulf %285, %285 : vector<1x1xf32>
    %295 = arith.subf %293, %294 : vector<1x1xf32>
    %cst_59 = arith.constant 0.000000e+00 : f32
    %296 = vector.broadcast %cst_59 : f32 to vector<1x1xf32>
    %297 = arith.maximumf %295, %296 : vector<1x1xf32>
    %cst_60 = arith.constant 9.99999974E-6 : f32
    %298 = vector.broadcast %cst_60 : f32 to vector<1x1xf32>
    %299 = arith.addf %297, %298 : vector<1x1xf32>
    %300 = math.rsqrt %299 : vector<1x1xf32>
    %301 = vector.broadcast %15 : f32 to vector<1x1xf32>
    %302 = arith.mulf %301, %300 : vector<1x1xf32>
    %303 = arith.mulf %285, %302 : vector<1x1xf32>
    %304 = vector.broadcast %16 : f32 to vector<1x1xf32>
    %305 = arith.subf %304, %303 : vector<1x1xf32>
    %306 = vector.broadcast %302 : vector<1x1xf32> to vector<8x16xf32>
    %307 = arith.mulf %278, %306 : vector<8x16xf32>
    %308 = vector.broadcast %305 : vector<1x1xf32> to vector<8x16xf32>
    %309 = arith.addf %307, %308 : vector<8x16xf32>
    %cst_61 = arith.constant 0.000000e+00 : f32
    %310 = vector.broadcast %cst_61 : f32 to vector<8x16xf32>
    %311 = arith.maximumf %309, %310 : vector<8x16xf32>
    %312 = vector.shape_cast %311 : vector<8x16xf32> to vector<1x8x16xf32>
    %cst_62 = arith.constant dense<0.000000e+00> : vector<1xf32>
    %313 = vector.multi_reduction <add>, %312, %cst_62 [1, 2] : vector<1x8x16xf32> to vector<1xf32>
    %314 = vector.shape_cast %313 : vector<1xf32> to vector<1x1x1xf32>
    %315 = vector.extract %314[0, 0, 0] : f32 from vector<1x1x1xf32>
    %316 = vector.broadcast %315 : f32 to vector<1x1xf32>
    %cst_63 = arith.constant 7.812500e-03 : f32
    %317 = vector.broadcast %cst_63 : f32 to vector<1x1xf32>
    %318 = arith.mulf %316, %317 : vector<1x1xf32>
    %319 = arith.mulf %311, %311 : vector<8x16xf32>
    %320 = vector.shape_cast %319 : vector<8x16xf32> to vector<1x8x16xf32>
    %cst_64 = arith.constant dense<0.000000e+00> : vector<1xf32>
    %321 = vector.multi_reduction <add>, %320, %cst_64 [1, 2] : vector<1x8x16xf32> to vector<1xf32>
    %322 = vector.shape_cast %321 : vector<1xf32> to vector<1x1x1xf32>
    %323 = vector.extract %322[0, 0, 0] : f32 from vector<1x1x1xf32>
    %324 = vector.broadcast %323 : f32 to vector<1x1xf32>
    %cst_65 = arith.constant 7.812500e-03 : f32
    %325 = vector.broadcast %cst_65 : f32 to vector<1x1xf32>
    %326 = arith.mulf %324, %325 : vector<1x1xf32>
    %327 = arith.mulf %318, %318 : vector<1x1xf32>
    %328 = arith.subf %326, %327 : vector<1x1xf32>
    %cst_66 = arith.constant 0.000000e+00 : f32
    %329 = vector.broadcast %cst_66 : f32 to vector<1x1xf32>
    %330 = arith.maximumf %328, %329 : vector<1x1xf32>
    %331 = arith.mulf %18, %17 : f32
    %332 = arith.mulf %17, %17 : f32
    %333 = vector.broadcast %332 : f32 to vector<1x1xf32>
    %334 = arith.mulf %333, %330 : vector<1x1xf32>
    %cst_67 = arith.constant 9.99999974E-6 : f32
    %335 = vector.broadcast %cst_67 : f32 to vector<1x1xf32>
    %336 = arith.addf %334, %335 : vector<1x1xf32>
    %337 = math.rsqrt %336 : vector<1x1xf32>
    %338 = vector.broadcast %331 : f32 to vector<1x1xf32>
    %339 = arith.mulf %338, %337 : vector<1x1xf32>
    %340 = arith.mulf %318, %339 : vector<1x1xf32>
    %341 = vector.broadcast %19 : f32 to vector<1x1xf32>
    %342 = arith.subf %341, %340 : vector<1x1xf32>
    %343 = vector.broadcast %339 : vector<1x1xf32> to vector<8x16xf32>
    %344 = arith.mulf %311, %343 : vector<8x16xf32>
    %345 = vector.broadcast %342 : vector<1x1xf32> to vector<8x16xf32>
    %346 = arith.addf %344, %345 : vector<8x16xf32>
    %cst_68 = arith.constant 0.000000e+00 : f32
    %347 = vector.broadcast %cst_68 : f32 to vector<8x16xf32>
    %348 = arith.subf %347, %346 : vector<8x16xf32>
    %349 = math.exp %348 : vector<8x16xf32>
    %cst_69 = arith.constant 1.000000e+00 : f32
    %350 = vector.broadcast %cst_69 : f32 to vector<8x16xf32>
    %351 = arith.addf %350, %349 : vector<8x16xf32>
    %cst_70 = arith.constant 1.000000e+00 : f32
    %352 = vector.broadcast %cst_70 : f32 to vector<8x16xf32>
    %353 = arith.divf %352, %351 : vector<8x16xf32>
    %c0_71 = arith.constant 0 : index
    %c0_72 = arith.constant 0 : index
    %c0_73 = arith.constant 0 : index
    %354 = vector.load %arg6[%c0_71, %c0_72, %c0_73] : memref<1x8x16xf32, #tpu.memory_space<vmem>>, vector<1x8x16xf32>
    %355 = vector.shape_cast %354 : vector<1x8x16xf32> to vector<8x16xf32>
    %356 = vector.shape_cast %353 : vector<8x16xf32> to vector<1x8x16xf32>
    tpu.vector_store %arg6[%c0_71, %c0_72, %c0_73], %356 {strides = array<i32>} : memref<1x8x16xf32, #tpu.memory_space<vmem>>, vector<1x8x16xf32>,
    return
  }
  func.func @transform_0(%arg0: i32) -> i32 {
    %c0_i32 = arith.constant 0 : i32
    %c0_i32_0 = arith.constant 0 : i32
    return %c0_i32 : i32
  }
  func.func @transform_1(%arg0: i32) -> i32 {
    %c0_i32 = arith.constant 0 : i32
    %c0_i32_0 = arith.constant 0 : i32
    return %c0_i32 : i32
  }
  func.func @transform_2(%arg0: i32) -> i32 {
    %c0_i32 = arith.constant 0 : i32
    %c0_i32_0 = arith.constant 0 : i32
    return %c0_i32 : i32
  }
  func.func @transform_3(%arg0: i32) -> (i32, i32) {
    %c0_i32 = arith.constant 0 : i32
    %c0_i32_0 = arith.constant 0 : i32
    %c0_i32_1 = arith.constant 0 : i32
    return %c0_i32, %c0_i32_0 : i32, i32
  }
  func.func @transform_4(%arg0: i32) -> (i32, i32, i32) {
    %c0_i32 = arith.constant 0 : i32
    %c0_i32_0 = arith.constant 0 : i32
    %c0_i32_1 = arith.constant 0 : i32
    return %arg0, %c0_i32, %c0_i32_0 : i32, i32, i32
  }
  func.func @transform_5(%arg0: i32) -> (i32, i32, i32) {
    %c0_i32 = arith.constant 0 : i32
    %c0_i32_0 = arith.constant 0 : i32
    %c0_i32_1 = arith.constant 0 : i32
    return %arg0, %c0_i32, %c0_i32_0 : i32, i32, i32
  }
}

</mosaic_0001>

<bundles_post_ra>
// kernel: cnn_time_forward.1
= control target key start
LH: loop header
LB: loop body
LE: loop exit
PB: predicated region body
PF: predicated region fallthrough
CT: control target
= control target key end

     0   :  { %10 = vsyncpa [#allocation4], 0  ;;  %s1378_s0 = inlined_call_operand.vmem [shape: f32[20], index: 0, kind: input, shape index: {}]   ;;  %s1379_s1 = inlined_call_operand.vmem [shape: f32[5], index: 1, kind: input, shape index: {}]   ;;  %s1380_s2 = inlined_call_operand.vmem [shape: f32[9], index: 2, kind: input, shape index: {}]   ;;  %s1381_s3 = inlined_call_operand.vmem [shape: f32[1,4], index: 3, kind: input, shape index: {}]   ;;  %s1382_s4 = inlined_call_operand.vmem [shape: f32[4,8,1], index: 4, kind: input, shape index: {}]   ;;  %s1383_s5 = inlined_call_operand.hbm [shape: f32[4,8,16], index: 5, kind: output, shape index: {}]  }
   0x1   :  { %11 = vsyncpa [#allocation6], 0 }
   0x2   :  { %12 = vsyncpa [#allocation3], 0 }
   0x3   :  { %14 = vsyncpa [#allocation3 + $0x1], 0  ;;  %s1188_s18 = smov 0   ;;  %s1190_s19 = smov 0  }
   0x4   :  { %s1192_s20 = smov 0   ;;  %s1194_s21 = smov 0  }
   0x5 LB: > { %s1209_s22 = sadd.s32 4294967295, %s1141_s21   ;;  %s851_s23 = sadd.s32 4294967294, %s1141_s21   ;;  %s1141_s21 = sphi %s1194_s21, %s1401_s21   ;;  %s1137_s20 = sphi %s1192_s20, %s1400_s20   ;;  %s1133_s19 = sphi %s1190_s19, %s1399_s19   ;;  %s1129_s18 = sphi %s1188_s18, %s1398_s18  }
   0x6   : > { %s1213_s24 = sadd.s32 1, %s1141_s21   ;;  %s137_s25 = sadd.s32 1, %s1137_s20 }
   0x7   : > { %s134_s26 = ssub.s32 %s1141_s21, %s1213_s24  ;;  %p147_p0 = scmp.ne.s32.totalorder %s1137_s20, %s1133_s19 }
   0x8   : > { %p135_p1 = scmp.eq.s32.totalorder %s134_s26, 0  ;;  %p148_p2 = scmp.eq.s32.totalorder %s1209_s22, 3 }
   0x9   : > { %p153_p3 = scmp.ne.s32.totalorder %s1133_s19, %s1129_s18  ;;  %p154_p4 = scmp.eq.s32.totalorder %s851_s23, 3 }
   0xa   : > { %s1224_s27 = scalar_select %p135_p1, %s1137_s20, %s137_s25  }
   0xb   : > { %p1226_p5 = por %p148_p2, %p147_p0  ;;  %p1230_p6 = por %p154_p4, %p153_p3 }
   0xc   : > { %p852_p7 = scmp.ge.s32.totalorder %s1141_s21, 1  ;;  %p161_p8 = scmp.lt.s32.totalorder %s1141_s21, 5 }
   0xd   : > { %s1387_s28 = scalar_select %p1226_p5, 1, 0 }
   0xe   : > { %s1388_s29 = scalar_select %p1230_p6, 1, 0 }
   0xf   : > { %p1384_p9 = scmp.eq.s32.totalorder %s1209_s22, 0  ;;  %p1237_p10 = pnand %p852_p7, %p161_p8 }
  0x10   : > { %s185_s8 = sshll.u32 %s1379_s1, 4  ;;  %s174_s11 = sshll.u32 %s1378_s0, 4  ;;  %s186_s8 = int_to_ptr.vmem [resolvable:$true] %s185_s8  ;;  %s175_s11 = int_to_ptr.vmem [resolvable:$true] %s174_s11 }
  0x11   : > { %s1389_s30 = scalar_select %p1237_p10, 1, 0 }
  0x12   : > { %p941_p11 = pneg %p1237_p10  ;;  %s196_s15 = sshll.u32 %s1380_s2, 4  ;;  %s1258_s15 = int_to_ptr.vmem [resolvable:$true] %s196_s15 }
  0x13   : > { %s1028_s16 = scalar_lea.vmem %s186_s8, 16  ;;  %p1036_p3 = scmp.lt.s32.totalorder %s186_s8, %s186_s8 }
  0x14   : > { %p1251_p12 = pnand %p1384_p9, %p941_p11  ;;  %p1029_p13 = scmp.ne.s32.totalorder %s186_s8, %s1028_s16 }
  0x15   : > { %p1037_p4 = scmp.lt.s32.totalorder %s1028_s16, %s1028_s16 }
  0x16   : > { %p1030_p0 = pneg %p1251_p12 }
  0x17   : > { %p1038_p7 = por %p1037_p4, %p1036_p3 }
  0x18   : > { %p1031_p1 = pnand %p1030_p0, %p1029_p13 }
  0x1a   : > { %p1032_p2 = pneg %p1031_p1 }
  0x1c   : > { %p1039_p8 = pnand %p1038_p7, %p1032_p2 }
  0x1e   : > { %1042 = shalt.err (!%p1039_p8)
}
  0x1f   : > { %s1143_s17 = smov [#allocation5]   ;;  %s1043_s23 = scalar_lea.vmem %s175_s11, 16 }
  0x20   : > { %947 = dma.vmem_to_smem (!%p1251_p12), %s186_s8, 16, %s1143_s17, [#allocation6]  }
  0x21   : > { %p1044_p11 = scmp.ne.s32.totalorder %s175_s11, %s1043_s23  ;;  %p1051_p5 = scmp.lt.s32.totalorder %s175_s11, %s175_s11 }
  0x22   : > { %p1052_p10 = scmp.lt.s32.totalorder %s1043_s23, %s1043_s23 }
  0x23   : > { %p1046_p9 = pnand %p1044_p11, %p1030_p0 }
  0x24   : > { %p1053_p13 = por %p1052_p10, %p1051_p5 }
  0x25   : > { %p1047_p6 = pneg %p1046_p9 }
  0x27   : > { %p1054_p1 = pnand %p1053_p13, %p1047_p6 }
  0x29   : > { %1057 = shalt.err (!%p1054_p1)
}
  0x2a   : > { %s1144_s25 = smov [#allocation2]   ;;  %s1058_s26 = scalar_lea.vmem %s1258_s15, 16 }
  0x2b   : > { %944 = dma.vmem_to_smem (!%p1251_p12), %s175_s11, 16, %s1144_s25, [#allocation4]  }
  0x2c   : > { %p1059_p2 = scmp.ne.s32.totalorder %s1258_s15, %s1058_s26  ;;  %p1066_p9 = scmp.lt.s32.totalorder %s1258_s15, %s1258_s15 }
  0x2d   : > { %p1067_p7 = scmp.lt.s32.totalorder %s1058_s26, %s1058_s26 }
  0x2e   : > { %p1061_p3 = pnand %p1059_p2, %p1030_p0 }
  0x2f   : > { %p1068_p5 = por %p1067_p7, %p1066_p9 }
  0x30   : > { %p1062_p4 = pneg %p1061_p3 }
  0x32   : > { %p1069_p6 = pnand %p1068_p5, %p1062_p4 }
  0x34   : > { %1072 = shalt.err (!%p1069_p6)
}
  0x35   : > { %s1145_s6 = smov [#allocation7]   ;;  %p1391_p10 = scmp.ne.s32.totalorder %s1389_s30, 0 }
  0x36   : > { %950 = dma.vmem_to_smem (!%p1251_p12), %s1258_s15, 16, %s1145_s6, [#allocation6]  }
  0x37   : > { %219 = sbr.rel (%p1391_p10) target bundleno = 3093 (0xc15), region = 40  ;;  %p1392_p8 = scmp.eq.s32.totalorder (!%p1391_p10), %s1209_s22, 0 }
  0x3c   : > { %1116 = dma.done.wait (%p1392_p8), [#allocation4], 16   ;;  %p1393_p0 = pmov %p1392_p8 }
  0x3e   : > { %1118 = vsyncadd (%p1393_p0), [#allocation4], 4294967280  ;;  %p1394_p11 = pmov %p1393_p0 }
  0x3f   : > { %p1395_p13 = pmov %p1393_p0 }
  0x40   : > { %1120 = dma.done.wait (%p1394_p11), [#allocation6], 32  }
  0x41   : > { %1122 = vsyncadd (%p1395_p13), [#allocation6], 4294967264 }
  0x42   : > { %233 = sfence }
  0x43   : > { %p255_p1 = scmp.lt.s32.totalorder %s1209_s22, 3  ;;  %vm280_vm0 = vcmask 7168   ;;  %v1146_v4 = vmov 0   ;;  %s864_s11 = sld [smem:[#allocation2 + $0x2]]  ;;  %v882_v37 = vld [vmem:[%s1381_s3] ss:$0 sm:$0xff] }
  0x44   : > { %1008 = vset.pattern.permute.xlu1 %v1146_v4  ;;  %1009 = vset.pattern.permute.xlu0 %v1146_v4  ;;  %s865_s12 = sld [smem:[#allocation2 + $0x3]]  ;;  %vm336_vm1 = vcmask 31744   ;;  %vm384_vm2 = vcmask 64512   ;;  %s1150_s17 = smov 2   ;;  %vm572_vm3 = vcmask 130048  }
  0x45   : > { %s256_s7 = scalar_select %p255_p1, %s1209_s22, 3 }
  0x46   : > { %s259_s15 = sld [smem:[#allocation2]]  ;;  %p1396_p2 = scmp.ne.s32.totalorder %s1387_s28, 0 }
  0x47   : > { %s862_s8 = sshll.u32 %s256_s7, 3  ;;  %s863_s16 = sld [smem:[#allocation2 + $0x1]] }
  0x48   : > { %s258_s10 = scalar_lea.vmem %s1382_s4, %s862_s8  ;;  %s866_s25 = sld [smem:[#allocation2 + $0x4]] }
  0x49   : > { %v279_v0 = vld [vmem:[%s258_s10] sm:$0xff]  ;;  %v306_v20 = vstv %s864_s11  ;;  %s867_s8 = sld [smem:[#allocation2 + $0x5]]  ;;  %s1147_s10 = smov 4  }
  0x4a   : > { %v281_v1 = vsel %vm280_vm0, %v279_v0, 0.0  ;;  %v293_v2 = vmul.f32 %v279_v0, %v279_v0  ;;  %v308_v24 = vstv %s865_s12  ;;  %s868_s30 = sld [smem:[#allocation2 + $0x6]] }
  0x4b   : > { %282 = vadd.xlane.f32.xlu0 %v281_v1  ;;  %s885_s11 = sld [smem:[#allocation5 + $0x3]] }
  0x4c   : > { %v294_v3 = vsel %vm280_vm0, %v293_v2, 0.0  ;;  %v315_v31 = vstv %s259_s15  ;;  %s883_s12 = sld [smem:[#allocation5 + $0x1]]  ;;  %s1148_s15 = smov 3  }
  0x4d   : > { %v318_v36 = vstv %s863_s16  ;;  %s1149_s16 = smov 1   ;;  %s386_s23 = sld [smem:[#allocation5]] }
  0x4e   : > { %s366_s7 = smul.f32 %s866_s25, %s866_s25 }
  0x4f   : > { %295 = vadd.xlane.f32.xlu0 %v294_v3  ;;  %s365_s9 = smul.f32 %s867_s8, %s866_s25  ;;  %s1151_s25 = smov 124  }
  0x50   : > { %v367_v2 = vstv %s366_s7  ;;  %s869_s7 = sld [smem:[#allocation2 + $0x7]] }
  0x51   : > { %s870_s8 = sld [smem:[#allocation2 + $0x8]] }
  0xd4   : > { %v283_v5 = vpop.xlane.xlu0 %282 }
  0xd5   : > { %v284_v6 = vrot.slane %v283_v5, 4 }
  0xd7   : > { %v285_v7 = vadd.f32 %v284_v6, %v283_v5  ;;  %v371_v6 = vstv %s365_s9 }
  0xd8   : > { %v296_v8 = vpop.xlane.xlu0 %295 }
  0xd9   : > { %v286_v9 = vrot.slane %v285_v7, 2  ;;  %v297_v10 = vrot.slane %v296_v8, 4 }
  0xdb   : > { %v298_v11 = vadd.f32 %v297_v10, %v296_v8  ;;  %v287_v12 = vadd.f32 %v286_v9, %v285_v7  ;;  %v374_v9 = vstv %s868_s30  ;;  %s871_s30 = sld [smem:[#allocation2 + $0x9]] }
  0xdd   : > { %v299_v13 = vrot.slane %v298_v11, 2  ;;  %v288_v14 = vrot.slane %v287_v12, 1 }
  0xdf   : > { %v289_v15 = vadd.f32 %v288_v14, %v287_v12  ;;  %v300_v16 = vadd.f32 %v299_v13, %v298_v11 }
  0xe1   : > { %899 = vpush %v289_v15  ;;  %v301_v17 = vrot.slane %v300_v16, 1 }
  0xe3   : > { %v302_v18 = vadd.f32 %v301_v17, %v300_v16  ;;  %v406_v16 = vstv %s885_s11  ;;  %v390_v17 = vstv %s883_s12  ;;  %s504_s12 = smul.f32 %s871_s30, %s871_s30 }
  0xe5   : > { %901 = vpush %v302_v18 }
 0x112   : > { %s900_s13 = spop %899 }
 0x113   : > { %v291_v19 = vstv %s900_s13  ;;  %s884_s13 = sld [smem:[#allocation5 + $0x2]] }
 0x114   : > { %v292_v21 = vmul.f32 0.125, %v291_v19 }
 0x116   : > { %v307_v22 = vmul.f32 %v306_v20, %v292_v21  ;;  %s902_s14 = spop %901 }
 0x117   : > { %v304_v23 = vstv %s902_s14  ;;  %s886_s14 = sld [smem:[#allocation5 + $0x4]] }
 0x118   : > { %v305_v25 = vmul.f32 0.125, %v304_v23  ;;  %v310_v26 = vmul.f32 %v307_v22, %v307_v22 }
 0x11a   : > { %v309_v27 = vmul.f32 %v308_v24, %v305_v25 }
 0x11c   : > { %v311_v28 = vsub.f32 %v309_v27, %v310_v26  ;;  %v387_v26 = vstv %s386_s23 }
 0x11d   : > { %v414_v24 = vstv %s886_s14  ;;  %s873_s14 = sld [smem:[#allocation2 + $0xb]] }
 0x11e   : > { %v312_v29 = vmax.f32 %v311_v28, 0.0 }
 0x120   : > { %v313_v30 = vadd.f32 1e-05, %v312_v29 }
 0x122   : > { %1010 = vrsqrt.f32 %v313_v30 }
 0x12f   : > { %v1011_v32 = vpop.eup %1010 }
 0x130   : > { %v316_v33 = vmul.f32 %v1011_v32, %v315_v31 }
 0x132   : > { %v320_v34 = vmul.f32 %v316_v33, %v279_v0  ;;  %v317_v35 = vmul.f32 %v316_v33, %v307_v22  ;;  %v398_v22 = vstv %s884_s13  ;;  %s872_s13 = sld [smem:[#allocation2 + $0xa]] }
 0x134   : > { %324 = vperm.xlu1 %1008, %v320_v34   ;;  %v319_v39 = vsub.f32 %v318_v36, %v317_v35 }
 0x138   : > { %s503_s23 = smul.f32 %s872_s13, %s871_s30  ;;  %s876_s30 = sld [smem:[#allocation2 + $0xe]] }
 0x139   : > { %s890_s13 = sld [smem:[#allocation7 + $0x4]] }
 0x1af   : > { %v325_v38 = vpop.permute.xlu1 %324 }
 0x1b0   : > { %v333_v40 = vmul.f32 %v882_v37, %v325_v38 }
 0x1b2   : > { %v334_v41 = vadd.f32 %v333_v40, %v319_v39 }
 0x1b4   : > { %v335_v42 = vmax.f32 %v334_v41, 0.0 }
 0x1b6   : > { %v337_v43 = vsel %vm336_vm1, %v335_v42, 0.0  ;;  %v349_v44 = vmul.f32 %v335_v42, %v335_v42 }
 0x1b7   : > { %338 = vadd.xlane.f32.xlu1 %v337_v43 }
 0x1b8   : > { %v350_v45 = vsel %vm336_vm1, %v349_v44, 0.0 }
 0x1b9   : > { %351 = vadd.xlane.f32.xlu0 %v350_v45 }
 0x240   : > { %v339_v46 = vpop.xlane.xlu1 %338 }
 0x241   : > { %v340_v47 = vrot.slane %v339_v46, 4 }
 0x242   : > { %v352_v48 = vpop.xlane.xlu0 %351 }
 0x243   : > { %v341_v49 = vadd.f32 %v340_v47, %v339_v46  ;;  %v353_v50 = vrot.slane %v352_v48, 4 }
 0x245   : > { %v342_v51 = vrot.slane %v341_v49, 2  ;;  %v354_v52 = vadd.f32 %v353_v50, %v352_v48 }
 0x247   : > { %v355_v53 = vrot.slane %v354_v52, 2  ;;  %v343_v54 = vadd.f32 %v342_v51, %v341_v49 }
 0x249   : > { %v344_v55 = vrot.slane %v343_v54, 1  ;;  %v356_v56 = vadd.f32 %v355_v53, %v354_v52 }
 0x24b   : > { %v345_v57 = vadd.f32 %v344_v55, %v343_v54  ;;  %v357_v58 = vrot.slane %v356_v56, 1 }
 0x24d   : > { %903 = vpush %v345_v57  ;;  %v358_v59 = vadd.f32 %v357_v58, %v356_v56 }
 0x24f   : > { %905 = vpush %v358_v59 }
 0x27e   : > { %s904_s26 = spop %903 }
 0x27f   : > { %v347_v60 = vstv %s904_s26 }
 0x280   : > { %v348_v61 = vmul.f32 0.03125, %v347_v60  ;;  %s906_s6 = spop %905 }
 0x281   : > { %v360_v62 = vstv %s906_s6 }
 0x282   : > { %v362_v63 = vmul.f32 %v348_v61, %v348_v61  ;;  %v361_v0 = vmul.f32 0.03125, %v360_v62 }
 0x284   : > { %v363_v1 = vsub.f32 %v361_v0, %v362_v63  ;;  %v459_v63 = vstv %s869_s7 }
 0x286   : > { %v364_v3 = vmax.f32 %v363_v1, 0.0 }
 0x288   : > { %v368_v4 = vmul.f32 %v367_v2, %v364_v3  ;;  %v462_v2 = vstv %s870_s8  ;;  %s875_s8 = sld [smem:[#allocation2 + $0xd]] }
 0x28a   : > { %v369_v5 = vadd.f32 1e-05, %v368_v4 }
 0x28c   : > { %1012 = vrsqrt.f32 %v369_v5 }
 0x299   : > { %v1013_v7 = vpop.eup %1012 }
 0x29a   : > { %v372_v8 = vmul.f32 %v1013_v7, %v371_v6 }
 0x29c   : > { %v373_v10 = vmul.f32 %v372_v8, %v348_v61  ;;  %v376_v12 = vmul.f32 %v372_v8, %v335_v42 }
 0x29e   : > { %v375_v11 = vsub.f32 %v374_v9, %v373_v10 }
 0x2a0   : > { %v377_v13 = vadd.f32 %v376_v12, %v375_v11 }
 0x2a2   : > { %v378_v14 = vmax.f32 %v377_v13, 0.0 }
 0x2a4   : > { %380 = vrot.lane.b32.xlu0 %v378_v14, %s1147_s10 }
 0x316   : > { %v381_v15 = vpop.permute.xlu0 %380 }
 0x317   : > { %v383_v18 = vsel %vm336_vm1, 0.0, %v381_v15 }
 0x318   : > { %v385_v19 = vsel %vm384_vm2, %v383_v18, 0.0 }
 0x319   : > { %v407_v20 = vmul.f32 %v406_v16, %v385_v19  ;;  %v391_v21 = vmul.f32 %v390_v17, %v385_v19  ;;  %v399_v23 = vmul.f32 %v398_v22, %v385_v19  ;;  %v415_v25 = vmul.f32 %v414_v24, %v385_v19 }
 0x31a   : > { %v388_v28 = vmul.f32 %v387_v26, %v385_v19 }
 0x31b   : > { %409 = vrot.lane.b32.xlu1 %v407_v20, %s1148_s15  ;;  %393 = vrot.lane.b32.xlu0 %v391_v21, %s1149_s16 }
 0x31f   : > { %401 = vrot.lane.b32.xlu0 %v399_v23, %s1150_s17 }
 0x323   : > { %417 = vrot.lane.b32.xlu0 %v415_v25, %s1147_s10 }
 0x38d   : > { %v394_v27 = vpop.permute.xlu0 %393  ;;  %v410_v32 = vpop.permute.xlu1 %409 }
 0x38e   : > { %v396_v29 = vadd.f32 %v394_v27, %v388_v28 }
 0x391   : > { %v402_v30 = vpop.permute.xlu0 %401 }
 0x392   : > { %v404_v31 = vadd.f32 %v402_v30, %v396_v29 }
 0x394   : > { %v412_v33 = vadd.f32 %v410_v32, %v404_v31 }
 0x395   : > { %v418_v34 = vpop.permute.xlu0 %417 }
 0x396   : > { %v420_v35 = vadd.f32 %v418_v34, %v412_v33  ;;  %v505_v33 = vstv %s504_s12  ;;  %s887_s12 = sld [smem:[#allocation7 + $0x1]] }
 0x398   : > { %422 = vrot.lane.b32.xlu0 %v420_v35, %s1151_s25  ;;  %v437_v36 = vmul.f32 %v420_v35, %v420_v35 }
 0x39c   : > { %439 = vrot.lane.b32.xlu0 %v437_v36, %s1151_s25 }
 0x40a   : > { %v423_v37 = vpop.permute.xlu0 %422 }
 0x40b   : > { %v425_v38 = vsel %vm384_vm2, %v423_v37, 0.0  ;;  %v509_v37 = vstv %s503_s23  ;;  %s892_s23 = sld [smem:[#allocation7 + $0x6]] }
 0x40c   : > { %426 = vadd.xlane.f32.xlu0 %v425_v38 }
 0x40e   : > { %v440_v39 = vpop.permute.xlu0 %439 }
 0x40f   : > { %v442_v40 = vsel %vm384_vm2, %v440_v39, 0.0 }
 0x410   : > { %443 = vadd.xlane.f32.xlu1 %v442_v40  ;;  %v512_v40 = vstv %s873_s14  ;;  %s889_s14 = sld [smem:[#allocation7 + $0x3]] }
 0x495   : > { %v427_v41 = vpop.xlane.xlu0 %426 }
 0x496   : > { %v428_v42 = vrot.slane %v427_v41, 4 }
 0x498   : > { %v429_v43 = vadd.f32 %v428_v42, %v427_v41 }
 0x499   : > { %v444_v44 = vpop.xlane.xlu1 %443 }
 0x49a   : > { %v430_v45 = vrot.slane %v429_v43, 2  ;;  %v445_v46 = vrot.slane %v444_v44, 4 }
 0x49c   : > { %v446_v47 = vadd.f32 %v445_v46, %v444_v44  ;;  %v431_v48 = vadd.f32 %v430_v45, %v429_v43 }
 0x49e   : > { %v447_v49 = vrot.slane %v446_v47, 2  ;;  %v432_v50 = vrot.slane %v431_v48, 1 }
 0x4a0   : > { %v433_v51 = vadd.f32 %v432_v50, %v431_v48  ;;  %v448_v52 = vadd.f32 %v447_v49, %v446_v47 }
 0x4a2   : > { %907 = vpush %v433_v51  ;;  %v449_v53 = vrot.slane %v448_v52, 1 }
 0x4a4   : > { %v450_v54 = vadd.f32 %v449_v53, %v448_v52 }
 0x4a6   : > { %909 = vpush %v450_v54 }
 0x4d3   : > { %s908_s26 = spop %907 }
 0x4d4   : > { %v435_v55 = vstv %s908_s26 }
 0x4d5   : > { %v436_v56 = vmul.f32 0.015625, %v435_v55 }
 0x4d7   : > { %s910_s6 = spop %909  ;;  %v454_v58 = vmul.f32 %v436_v56, %v436_v56 }
 0x4d8   : > { %v452_v57 = vstv %s910_s6 }
 0x4d9   : > { %v453_v59 = vmul.f32 0.015625, %v452_v57 }
 0x4db   : > { %v455_v60 = vsub.f32 %v453_v59, %v454_v58 }
 0x4dd   : > { %v456_v61 = vmax.f32 %v455_v60, 0.0 }
 0x4df   : > { %v457_v62 = vadd.f32 1e-05, %v456_v61 }
 0x4e1   : > { %1014 = vrsqrt.f32 %v457_v62 }
 0x4ee   : > { %v1015_v0 = vpop.eup %1014 }
 0x4ef   : > { %v460_v1 = vmul.f32 %v1015_v0, %v459_v63 }
 0x4f1   : > { %v461_v3 = vmul.f32 %v460_v1, %v436_v56  ;;  %v464_v5 = vmul.f32 %v460_v1, %v420_v35 }
 0x4f3   : > { %v463_v4 = vsub.f32 %v462_v2, %v461_v3 }
 0x4f5   : > { %v465_v6 = vadd.f32 %v464_v5, %v463_v4 }
 0x4f7   : > { %v466_v7 = vmax.f32 %v465_v6, 0.0 }
 0x4f9   : > { %468 = vrot.lane.b32.xlu0 %v466_v7, %s1151_s25  ;;  %v483_v8 = vmul.f32 %v466_v7, %v466_v7 }
 0x4fb   : > { %485 = vrot.lane.b32.xlu1 %v483_v8, %s1151_s25 }
 0x56b   : > { %v469_v9 = vpop.permute.xlu0 %468 }
 0x56c   : > { %v471_v10 = vsel %vm384_vm2, %v469_v9, 0.0 }
 0x56d   : > { %472 = vadd.xlane.f32.xlu0 %v471_v10  ;;  %v486_v11 = vpop.permute.xlu1 %485 }
 0x56e   : > { %v488_v12 = vsel %vm384_vm2, %v486_v11, 0.0 }
 0x56f   : > { %489 = vadd.xlane.f32.xlu1 %v488_v12 }
 0x5f6   : > { %v473_v13 = vpop.xlane.xlu0 %472 }
 0x5f7   : > { %v474_v14 = vrot.slane %v473_v13, 4 }
 0x5f8   : > { %v490_v15 = vpop.xlane.xlu1 %489 }
 0x5f9   : > { %v475_v16 = vadd.f32 %v474_v14, %v473_v13  ;;  %v491_v17 = vrot.slane %v490_v15, 4  ;;  %v562_v14 = vstv %s876_s30  ;;  %s574_s30 = sld [smem:[#allocation7]] }
 0x5fb   : > { %v476_v18 = vrot.slane %v475_v16, 2  ;;  %v492_v19 = vadd.f32 %v491_v17, %v490_v15 }
 0x5fd   : > { %v493_v20 = vrot.slane %v492_v19, 2  ;;  %v477_v21 = vadd.f32 %v476_v18, %v475_v16 }
 0x5ff   : > { %v478_v22 = vrot.slane %v477_v21, 1  ;;  %v494_v23 = vadd.f32 %v493_v20, %v492_v19 }
 0x601   : > { %v479_v24 = vadd.f32 %v478_v22, %v477_v21  ;;  %v495_v25 = vrot.slane %v494_v23, 1  ;;  %v578_v22 = vstv %s887_s12  ;;  %s878_s12 = sld [smem:[#allocation2 + $0x10]] }
 0x603   : > { %911 = vpush %v479_v24  ;;  %v496_v26 = vadd.f32 %v495_v25, %v494_v23 }
 0x605   : > { %913 = vpush %v496_v26 }
 0x634   : > { %s912_s9 = spop %911 }
 0x635   : > { %v481_v27 = vstv %s912_s9 }
 0x636   : > { %v482_v28 = vmul.f32 0.015625, %v481_v27  ;;  %s914_s11 = spop %913  ;;  %v602_v27 = vstv %s890_s13  ;;  %s879_s13 = sld [smem:[#allocation2 + $0x11]] }
 0x637   : > { %v498_v29 = vstv %s914_s11  ;;  %s888_s11 = sld [smem:[#allocation7 + $0x2]] }
 0x638   : > { %v500_v30 = vmul.f32 %v482_v28, %v482_v28  ;;  %v499_v31 = vmul.f32 0.015625, %v498_v29 }
 0x63a   : > { %v501_v32 = vsub.f32 %v499_v31, %v500_v30  ;;  %v618_v31 = vstv %s892_s23 }
 0x63c   : > { %v502_v34 = vmax.f32 %v501_v32, 0.0 }
 0x63d   : > { %v586_v21 = vstv %s888_s11  ;;  %s877_s11 = sld [smem:[#allocation2 + $0xf]] }
 0x63e   : > { %v506_v35 = vmul.f32 %v505_v33, %v502_v34 }
 0x640   : > { %v507_v36 = vadd.f32 1e-05, %v506_v35 }
 0x642   : > { %1016 = vrsqrt.f32 %v507_v36 }
 0x64f   : > { %v1017_v38 = vpop.eup %1016 }
 0x650   : > { %v510_v39 = vmul.f32 %v1017_v38, %v509_v37 }
 0x652   : > { %v511_v41 = vmul.f32 %v510_v39, %v482_v28  ;;  %v514_v43 = vmul.f32 %v510_v39, %v466_v7  ;;  %v594_v28 = vstv %s889_s14  ;;  %v575_v39 = vstv %s574_s30 }
 0x654   : > { %v513_v42 = vsub.f32 %v512_v40, %v511_v41 }
 0x656   : > { %v515_v44 = vadd.f32 %v514_v43, %v513_v42 }
 0x658   : > { %v516_v45 = vmax.f32 %v515_v44, 0.0 }
 0x65a   : > { %518 = vrot.lane.b32.xlu0 %v516_v45, %s1151_s25  ;;  %v533_v46 = vmul.f32 %v516_v45, %v516_v45 }
 0x65c   : > { %535 = vrot.lane.b32.xlu1 %v533_v46, %s1151_s25  ;;  %s874_s25 = sld [smem:[#allocation2 + $0xc]] }
 0x662   : > { %s554_s7 = smul.f32 %s874_s25, %s874_s25 }
 0x663   : > { %s553_s9 = smul.f32 %s875_s8, %s874_s25  ;;  %s891_s25 = sld [smem:[#allocation7 + $0x5]] }
 0x664   : > { %v555_v7 = vstv %s554_s7  ;;  %s1152_s7 = smov 6   ;;  %s1153_s8 = smov 5  }
 0x665   : > { %v559_v11 = vstv %s553_s9 }
 0x669   : > { %v610_v32 = vstv %s891_s25  ;;  %s724_s25 = smul.f32 %s879_s13, %s879_s13 }
 0x6cc   : > { %v519_v47 = vpop.permute.xlu0 %518 }
 0x6cd   : > { %v521_v48 = vsel %vm384_vm2, %v519_v47, 0.0 }
 0x6ce   : > { %522 = vadd.xlane.f32.xlu0 %v521_v48  ;;  %v536_v49 = vpop.permute.xlu1 %535 }
 0x6cf   : > { %v538_v50 = vsel %vm384_vm2, %v536_v49, 0.0 }
 0x6d0   : > { %539 = vadd.xlane.f32.xlu1 %v538_v50 }
 0x757   : > { %v523_v51 = vpop.xlane.xlu0 %522 }
 0x758   : > { %v524_v52 = vrot.slane %v523_v51, 4 }
 0x759   : > { %v540_v53 = vpop.xlane.xlu1 %539 }
 0x75a   : > { %v525_v54 = vadd.f32 %v524_v52, %v523_v51  ;;  %v541_v55 = vrot.slane %v540_v53, 4 }
 0x75c   : > { %v526_v56 = vrot.slane %v525_v54, 2  ;;  %v542_v57 = vadd.f32 %v541_v55, %v540_v53 }
 0x75e   : > { %v543_v58 = vrot.slane %v542_v57, 2  ;;  %v527_v59 = vadd.f32 %v526_v56, %v525_v54 }
 0x760   : > { %v528_v60 = vrot.slane %v527_v59, 1  ;;  %v544_v61 = vadd.f32 %v543_v58, %v542_v57 }
 0x762   : > { %v529_v62 = vadd.f32 %v528_v60, %v527_v59  ;;  %v545_v63 = vrot.slane %v544_v61, 1 }
 0x764   : > { %915 = vpush %v529_v62  ;;  %v546_v0 = vadd.f32 %v545_v63, %v544_v61 }
 0x766   : > { %917 = vpush %v546_v0 }
 0x795   : > { %s916_s26 = spop %915 }
 0x796   : > { %v531_v1 = vstv %s916_s26  ;;  %s894_s26 = sld [smem:[#allocation7 + $0x8]] }
 0x797   : > { %v532_v2 = vmul.f32 0.015625, %v531_v1  ;;  %s918_s6 = spop %917 }
 0x798   : > { %v548_v3 = vstv %s918_s6  ;;  %s893_s6 = sld [smem:[#allocation7 + $0x7]] }
 0x799   : > { %v550_v4 = vmul.f32 %v532_v2, %v532_v2  ;;  %v549_v5 = vmul.f32 0.015625, %v548_v3 }
 0x79b   : > { %v551_v6 = vsub.f32 %v549_v5, %v550_v4 }
 0x79c   : > { %v634_v35 = vstv %s894_s26  ;;  %s880_s26 = sld [smem:[#allocation2 + $0x12]] }
 0x79d   : > { %v552_v8 = vmax.f32 %v551_v6, 0.0 }
 0x79e   : > { %v626_v36 = vstv %s893_s6  ;;  %s881_s6 = sld [smem:[#allocation2 + $0x13]] }
 0x79f   : > { %v556_v9 = vmul.f32 %v555_v7, %v552_v8 }
 0x7a1   : > { %v557_v10 = vadd.f32 1e-05, %v556_v9 }
 0x7a3   : > { %1018 = vrsqrt.f32 %v557_v10 }
 0x7b0   : > { %v1019_v12 = vpop.eup %1018 }
 0x7b1   : > { %v560_v13 = vmul.f32 %v1019_v12, %v559_v11 }
 0x7b3   : > { %v561_v15 = vmul.f32 %v560_v13, %v532_v2  ;;  %v564_v17 = vmul.f32 %v560_v13, %v516_v45 }
 0x7b5   : > { %v563_v16 = vsub.f32 %v562_v14, %v561_v15 }
 0x7b7   : > { %v565_v18 = vadd.f32 %v564_v17, %v563_v16 }
 0x7b9   : > { %v566_v19 = vmax.f32 %v565_v18, 0.0 }
 0x7bb   : > { %568 = vrot.lane.b32.xlu0 %v566_v19, %s1147_s10 }
 0x82d   : > { %v569_v20 = vpop.permute.xlu0 %568 }
 0x82e   : > { %v571_v23 = vsel %vm384_vm2, 0.0, %v569_v20  ;;  %v679_v20 = vstv %s877_s11 }
 0x82f   : > { %v573_v24 = vsel %vm572_vm3, %v571_v23, 0.0  ;;  %v682_v23 = vstv %s878_s12 }
 0x830   : > { %v587_v25 = vmul.f32 %v586_v21, %v573_v24  ;;  %v579_v26 = vmul.f32 %v578_v22, %v573_v24  ;;  %v603_v29 = vmul.f32 %v602_v27, %v573_v24  ;;  %v595_v30 = vmul.f32 %v594_v28, %v573_v24 }
 0x831   : > { %v619_v33 = vmul.f32 %v618_v31, %v573_v24  ;;  %v611_v34 = vmul.f32 %v610_v32, %v573_v24  ;;  %v635_v37 = vmul.f32 %v634_v35, %v573_v24  ;;  %v627_v38 = vmul.f32 %v626_v36, %v573_v24 }
 0x832   : > { %589 = vrot.lane.b32.xlu0 %v587_v25, %s1150_s17  ;;  %581 = vrot.lane.b32.xlu1 %v579_v26, %s1149_s16  ;;  %s1154_s17 = smov 8   ;;  %s1155_s16 = smov 7   ;;  %v576_v40 = vmul.f32 %v575_v39, %v573_v24 }
 0x836   : > { %605 = vrot.lane.b32.xlu0 %v603_v29, %s1147_s10  ;;  %597 = vrot.lane.b32.xlu1 %v595_v30, %s1148_s15  ;;  %s1156_s10 = smov 120  }
 0x83a   : > { %621 = vrot.lane.b32.xlu0 %v619_v33, %s1152_s7  ;;  %613 = vrot.lane.b32.xlu1 %v611_v34, %s1153_s8  ;;  %s723_s7 = smul.f32 %s880_s26, %s879_s13  ;;  %s252_s8 = sand.u32 1, %s1133_s19  }
 0x83b   : > { %s748_s13 = scalar_lea.sflag [#allocation3], %s252_s8 }
 0x83e   : > { %637 = vrot.lane.b32.xlu0 %v635_v37, %s1154_s17  ;;  %629 = vrot.lane.b32.xlu1 %v627_v38, %s1155_s16  ;;  %s861_s17 = sshll.u32 %s252_s8, 3  ;;  %s896_s16 = sshll.u32 %s1209_s22, 7 }
 0x83f   : > { %s254_s30 = scalar_lea.vmem [#allocation8], %s861_s17  ;;  %s1342_s12 = scalar_lea.hbm %s1383_s5, %s896_s16 }
 0x8a4   : > { %v590_v41 = vpop.permute.xlu0 %589  ;;  %v582_v42 = vpop.permute.xlu1 %581 }
 0x8a5   : > { %v584_v43 = vadd.f32 %v582_v42, %v576_v40 }
 0x8a7   : > { %v592_v44 = vadd.f32 %v590_v41, %v584_v43 }
 0x8a8   : > { %v606_v45 = vpop.permute.xlu0 %605  ;;  %v598_v46 = vpop.permute.xlu1 %597 }
 0x8a9   : > { %v600_v47 = vadd.f32 %v598_v46, %v592_v44 }
 0x8ab   : > { %v608_v48 = vadd.f32 %v606_v45, %v600_v47 }
 0x8ac   : > { %v622_v49 = vpop.permute.xlu0 %621  ;;  %v614_v50 = vpop.permute.xlu1 %613 }
 0x8ad   : > { %v616_v51 = vadd.f32 %v614_v50, %v608_v48 }
 0x8af   : > { %v624_v52 = vadd.f32 %v622_v49, %v616_v51 }
 0x8b0   : > { %v630_v53 = vpop.permute.xlu1 %629  ;;  %v638_v55 = vpop.permute.xlu0 %637 }
 0x8b1   : > { %v632_v54 = vadd.f32 %v630_v53, %v624_v52 }
 0x8b3   : > { %v640_v56 = vadd.f32 %v638_v55, %v632_v54  ;;  %v725_v54 = vstv %s724_s25 }
 0x8b5   : > { %642 = vrot.lane.b32.xlu1 %v640_v56, %s1156_s10  ;;  %v657_v57 = vmul.f32 %v640_v56, %v640_v56 }
 0x8b7   : > { %659 = vrot.lane.b32.xlu0 %v657_v57, %s1156_s10 }
 0x927   : > { %v643_v58 = vpop.permute.xlu1 %642 }
 0x928   : > { %v645_v59 = vsel %vm572_vm3, %v643_v58, 0.0  ;;  %v729_v58 = vstv %s723_s7 }
 0x929   : > { %646 = vadd.xlane.f32.xlu1 %v645_v59  ;;  %v660_v60 = vpop.permute.xlu0 %659 }
 0x92a   : > { %v662_v61 = vsel %vm572_vm3, %v660_v60, 0.0 }
 0x92b   : > { %663 = vadd.xlane.f32.xlu0 %v662_v61  ;;  %v732_v61 = vstv %s881_s6 }
 0x9b2   : > { %v647_v62 = vpop.xlane.xlu1 %646 }
 0x9b3   : > { %v648_v63 = vrot.slane %v647_v62, 4 }
 0x9b4   : > { %v664_v0 = vpop.xlane.xlu0 %663 }
 0x9b5   : > { %v649_v1 = vadd.f32 %v648_v63, %v647_v62  ;;  %v665_v2 = vrot.slane %v664_v0, 4 }
 0x9b7   : > { %v650_v3 = vrot.slane %v649_v1, 2  ;;  %v666_v4 = vadd.f32 %v665_v2, %v664_v0 }
 0x9b9   : > { %v667_v5 = vrot.slane %v666_v4, 2  ;;  %v651_v6 = vadd.f32 %v650_v3, %v649_v1 }
 0x9bb   : > { %v652_v7 = vrot.slane %v651_v6, 1  ;;  %v668_v8 = vadd.f32 %v667_v5, %v666_v4 }
 0x9bd   : > { %v653_v9 = vadd.f32 %v652_v7, %v651_v6  ;;  %v669_v10 = vrot.slane %v668_v8, 1 }
 0x9bf   : > { %919 = vpush %v653_v9  ;;  %v670_v11 = vadd.f32 %v669_v10, %v668_v8 }
 0x9c1   : > { %921 = vpush %v670_v11 }
 0x9f0   : > { %s920_s15 = spop %919 }
 0x9f1   : > { %v655_v12 = vstv %s920_s15  ;;  %s761_s15 = sshll.u32 %s254_s30, 4  ;;  %s762_s15 = int_to_ptr.vmem [resolvable:$true] %s761_s15 }
 0x9f2   : > { %v656_v13 = vmul.f32 0.0078125, %v655_v12  ;;  %s922_s9 = spop %921 }
 0x9f3   : > { %v672_v14 = vstv %s922_s9 }
 0x9f4   : > { %v674_v15 = vmul.f32 %v656_v13, %v656_v13  ;;  %v673_v16 = vmul.f32 0.0078125, %v672_v14 }
 0x9f6   : > { %v675_v17 = vsub.f32 %v673_v16, %v674_v15 }
 0x9f8   : > { %v676_v18 = vmax.f32 %v675_v17, 0.0 }
 0x9fa   : > { %v677_v19 = vadd.f32 1e-05, %v676_v18 }
 0x9fc   : > { %1020 = vrsqrt.f32 %v677_v19 }
 0xa09   : > { %v1021_v21 = vpop.eup %1020 }
 0xa0a   : > { %v680_v22 = vmul.f32 %v1021_v21, %v679_v20 }
 0xa0c   : > { %v681_v24 = vmul.f32 %v680_v22, %v656_v13  ;;  %v684_v26 = vmul.f32 %v680_v22, %v640_v56 }
 0xa0e   : > { %v683_v25 = vsub.f32 %v682_v23, %v681_v24 }
 0xa10   : > { %v685_v27 = vadd.f32 %v684_v26, %v683_v25 }
 0xa12   : > { %v686_v28 = vmax.f32 %v685_v27, 0.0 }
 0xa14   : > { %688 = vrot.lane.b32.xlu0 %v686_v28, %s1156_s10  ;;  %v703_v29 = vmul.f32 %v686_v28, %v686_v28 }
 0xa16   : > { %705 = vrot.lane.b32.xlu1 %v703_v29, %s1156_s10 }
 0xa86   : > { %v689_v30 = vpop.permute.xlu0 %688 }
 0xa87   : > { %v691_v31 = vsel %vm572_vm3, %v689_v30, 0.0 }
 0xa88   : > { %692 = vadd.xlane.f32.xlu1 %v691_v31  ;;  %v706_v32 = vpop.permute.xlu1 %705 }
 0xa89   : > { %v708_v33 = vsel %vm572_vm3, %v706_v32, 0.0 }
 0xa8a   : > { %709 = vadd.xlane.f32.xlu0 %v708_v33 }
 0xb11   : > { %v693_v34 = vpop.xlane.xlu1 %692 }
 0xb12   : > { %v694_v35 = vrot.slane %v693_v34, 4 }
 0xb13   : > { %v710_v36 = vpop.xlane.xlu0 %709 }
 0xb14   : > { %v695_v37 = vadd.f32 %v694_v35, %v693_v34  ;;  %v711_v38 = vrot.slane %v710_v36, 4 }
 0xb16   : > { %v696_v39 = vrot.slane %v695_v37, 2  ;;  %v712_v40 = vadd.f32 %v711_v38, %v710_v36 }
 0xb18   : > { %v697_v41 = vadd.f32 %v696_v39, %v695_v37  ;;  %v713_v42 = vrot.slane %v712_v40, 2 }
 0xb1a   : > { %v698_v43 = vrot.slane %v697_v41, 1  ;;  %v714_v44 = vadd.f32 %v713_v42, %v712_v40 }
 0xb1c   : > { %v699_v45 = vadd.f32 %v698_v43, %v697_v41  ;;  %v715_v46 = vrot.slane %v714_v44, 1 }
 0xb1e   : > { %923 = vpush %v699_v45  ;;  %v716_v47 = vadd.f32 %v715_v46, %v714_v44 }
 0xb20   : > { %925 = vpush %v716_v47 }
 0xb4f   : > { %s924_s14 = spop %923 }
 0xb50   : > { %v701_v48 = vstv %s924_s14  ;;  %s1073_s14 = scalar_lea.vmem %s762_s15, 128 }
 0xb51   : > { %v702_v49 = vmul.f32 0.0078125, %v701_v48  ;;  %s926_s23 = spop %925  ;;  %p1074_p12 = scmp.ne.s32.totalorder %s762_s15, %s1073_s14 }
 0xb52   : > { %v718_v50 = vstv %s926_s23 }
 0xb53   : > { %v720_v51 = vmul.f32 %v702_v49, %v702_v49  ;;  %v719_v52 = vmul.f32 0.0078125, %v718_v50  ;;  %p1075_p3 = pnand %p1074_p12, %p1396_p2 }
 0xb55   : > { %v721_v53 = vsub.f32 %v719_v52, %v720_v51  ;;  %p1076_p4 = pneg %p1075_p3 }
 0xb57   : > { %v722_v55 = vmax.f32 %v721_v53, 0.0 }
 0xb59   : > { %v726_v56 = vmul.f32 %v725_v54, %v722_v55 }
 0xb5b   : > { %v727_v57 = vadd.f32 1e-05, %v726_v56 }
 0xb5d   : > { %1022 = vrsqrt.f32 %v727_v57 }
 0xb6a   : > { %v1023_v59 = vpop.eup %1022 }
 0xb6b   : > { %v730_v60 = vmul.f32 %v1023_v59, %v729_v58 }
 0xb6d   : > { %v731_v62 = vmul.f32 %v730_v60, %v702_v49  ;;  %v734_v0 = vmul.f32 %v730_v60, %v686_v28 }
 0xb6f   : > { %v733_v63 = vsub.f32 %v732_v61, %v731_v62 }
 0xb71   : > { %v735_v1 = vadd.f32 %v734_v0, %v733_v63 }
 0xb73   : > { %v736_v2 = vsub.f32 0.0, %v735_v1 }
 0xb75   : > { %v737_v3 = vmul.f32 1.442695, %v736_v2 }
 0xb77   : > { %1024 = vpow2.f32 %v737_v3 }
 0xb84   : > { %v1025_v4 = vpop.eup %1024 }
 0xb85   : > { %v739_v5 = vadd.f32 1.0, %v1025_v4 }
 0xb87   : > { %1026 = vrcp.f32 %v739_v5 }
 0xb94   : > { %v1027_v6 = vpop.eup %1026 }
 0xb95   : > { %743 = vrot.lane.b32.xlu0 %v1027_v6, %s1156_s10  ;;  %s1157_s10 = smov [#allocation8]  }
 0xb96   : > { %s1077_s23 = sshll.u32 %s1157_s10, 4  ;;  %s1078_s23 = int_to_ptr.vmem [resolvable:$false] %s1077_s23 }
 0xb97   : > { %s1079_s22 = scalar_lea.vmem %s1078_s23, 256  ;;  %p1080_p9 = scmp.lt.s32.totalorder %s762_s15, %s1078_s23 }
 0xb98   : > { %p1081_p7 = scmp.lt.s32.totalorder %s1079_s22, %s1073_s14 }
 0xb9a   : > { %p1082_p5 = por %p1081_p7, %p1080_p9 }
 0xb9c   : > { %p1083_p6 = pnand %p1082_p5, %p1076_p4 }
 0xc07   : > { %v744_v7 = vpop.permute.xlu0 %743 }
 0xc08   : > { %746 = vst.msk [vmem:[%s254_s30] sm:$0xff] %vm572_vm3, %v744_v7 }
 0xc09   : > { %1086 = shalt.err (!%p1083_p6)
}
 0xc0a   : > { %s1087_s25 = scalar_lea.hbm %s1342_s12, 128  ;;  %s1091_s7 = scalar_lea.hbm %s1383_s5, 512 }
 0xc0b   : > { %p1088_p10 = scmp.ne.s32.totalorder %s1342_s12, %s1087_s25  ;;  %p1092_p11 = scmp.lt.s32.totalorder %s1342_s12, %s1383_s5 }
 0xc0c   : > { %p1093_p13 = scmp.lt.s32.totalorder %s1091_s7, %s1087_s25 }
 0xc0d   : > { %p1089_p8 = pnand %p1088_p10, %p1396_p2 }
 0xc0e   : > { %p1094_p1 = por %p1093_p13, %p1092_p11 }
 0xc0f   : > { %p1090_p0 = pneg %p1089_p8 }
 0xc11   : > { %p1095_p12 = pnand %p1094_p1, %p1090_p0 }
 0xc13   : > { %1098 = shalt.err (!%p1095_p12)
}
 0xc14   : > { %939 = dma.vmem_to_hbm [thread:$0]  (%p1396_p2), %s762_s15, 128, %s1342_s12, %s748_s13  }
 0xc15 PF: > { %p961_p3 = scmp.ge.s32.totalorder %s1141_s21, 2  ;;  %s773_s16 = sand.u32 1, %s1129_s18  }
 0xc16   : > { %p1397_p4 = scmp.ne.s32.totalorder %s1388_s29, 0  ;;  %s774_s30 = scalar_lea.sflag [#allocation3], %s773_s16 }
 0xc18   : > { %p952_p9 = pnand %p961_p3, %p1397_p4 }
 0xc1a   : > { %p953_p7 = pneg %p952_p9 }
 0xc1c   : > { %1124 = dma.done.wait (%p953_p7), %s774_s30, 128  }
 0xc1d   : > { %1126 = vsyncadd (%p953_p7), %s774_s30, 4294967168  ;;  %p17_p5 = scmp.ge.s32.totalorder %s1213_s24, 6   ;;  %s1398_s18 = smov %s1133_s19 }
 0xc1e   : > { %s1399_s19 = smov %s1137_s20  ;;  %s1400_s20 = smov %s1224_s27 }
 0xc1f   : > { %s1401_s21 = smov %s1213_s24  ;;  %19 = sbr.rel (!%p17_p5) target bundleno = 5 (0x5), region = 88 }
 0xc24   :  { %779 = vsyncpa [#allocation3], 1 }
 0xc25   :  { %781 = vsyncpa [#allocation3 + $0x1], 1 }
 0xc26   :  { %782 = vsyncpa [#allocation4], 1 }
 0xc27   :  { %784 = vsyncpa [#allocation4 + $0x1], 1 }
 0xc28   :  { %785 = vsyncpa [#allocation6], 1 }

</bundles_post_ra>
